<compile_context>
chip_gen: v7x
topology: tpu7x:2x2x1
jax: 0.10.0
libtpu: 0.0.40
codegen_flags: <defaults>
</compile_context>

<pallas_src>
import functools

import jax
import jax.numpy as jnp
from jax.experimental import pallas as pl
from jax.experimental.pallas import tpu as pltpu


# --------------------------- tiling / compiler helpers -----------------------

@functools.lru_cache(maxsize=None)
def _vmem_limit_bytes():
    """Per-generation VMEM budget: ~100 MiB on v5e/v6e (128 MiB physical VMEM),
    ~48 MiB on v7x (64 MiB physical)."""
    cap = 64 * 1024 * 1024
    try:
        cap = int(pltpu.get_tpu_info().vmem_capacity_bytes)
    except Exception:
        pass
    return max(32 * 1024 * 1024, min(cap - 16 * 1024 * 1024, 100 * 1024 * 1024))


def _compiler_params(sem):
    return pltpu.CompilerParams(dimension_semantics=sem,
                                vmem_limit_bytes=_vmem_limit_bytes())


def _row_tile(m, pref=512):
    """Token-tile size (second-to-last dim); edge blocks are masked on write."""
    return m if m <= pref else pref


def _col_tile(n, pref=512):
    """Output-column tile (lane axis, multiple of 128/256 for the MXU)."""
    return n if n <= pref else pref


def _red_tile(n, pref=512):
    """Contraction-axis tile: must divide n exactly (no garbage accumulation)."""
    if n <= pref:
        return n
    for t in (pref, 256, 128):
        if n % t == 0:
            return t
    return n


def _seq_tile(s, pref=256):
    """Query/KV tile for flash attention; non-dividing tails are masked in-kernel."""
    if s <= pref:
        return s
    for t in (pref, 128):
        if s % t == 0:
            return t
    return pref


# ------------------------------- Pallas kernels ------------------------------

def _linear_kernel(x_ref, w_ref, b_ref, o_ref):
    acc = jnp.dot(x_ref[...].astype(jnp.bfloat16),
                  w_ref[...].astype(jnp.bfloat16),
                  preferred_element_type=jnp.float32)
    o_ref[...] = (acc + b_ref[...]).astype(o_ref.dtype)


def linear(x, w, b):
    """x:[M,K] @ w:[K,N](bf16) + b:[N] -> [M,N] f32, tiled over (M, N)."""
    M, K = x.shape
    N = w.shape[1]
    tm, tn = _row_tile(M), _col_tile(N)
    return pl.pallas_call(
        _linear_kernel,
        out_shape=jax.ShapeDtypeStruct((M, N), jnp.float32),
        grid=(pl.cdiv(M, tm), pl.cdiv(N, tn)),
        in_specs=[pl.BlockSpec((tm, K), lambda i, j: (i, 0)),
                  pl.BlockSpec((K, tn), lambda i, j: (0, j)),
                  pl.BlockSpec((1, tn), lambda i, j: (0, j))],
        out_specs=pl.BlockSpec((tm, tn), lambda i, j: (i, j)),
        compiler_params=_compiler_params(("parallel", "parallel")),
    )(x, w, b.reshape(1, N))


def _layernorm_kernel(x_ref, g_ref, b_ref, o_ref, *, eps):
    x = x_ref[...].astype(jnp.float32)
    mean = jnp.mean(x, axis=-1, keepdims=True)
    var = jnp.mean(jnp.square(x - mean), axis=-1, keepdims=True)
    y = (x - mean) * jax.lax.rsqrt(var + eps)
    o_ref[...] = (y * g_ref[...] + b_ref[...]).astype(o_ref.dtype)


def layernorm(x, g, b, eps=1e-6):
    M, D = x.shape
    tm = _row_tile(M)
    return pl.pallas_call(
        functools.partial(_layernorm_kernel, eps=eps),
        out_shape=jax.ShapeDtypeStruct((M, D), jnp.float32),
        grid=(pl.cdiv(M, tm),),
        in_specs=[pl.BlockSpec((tm, D), lambda i: (i, 0)),
                  pl.BlockSpec((1, D), lambda i: (0, 0)),
                  pl.BlockSpec((1, D), lambda i: (0, 0))],
        out_specs=pl.BlockSpec((tm, D), lambda i: (i, 0)),
        compiler_params=_compiler_params(("parallel",)),
    )(x, g.reshape(1, D), b.reshape(1, D))


def _ln_linear_kernel(x_ref, g_ref, bln_ref, w_ref, b_ref, o_ref, xn_ref, *, eps):
    """Fused pre-LayerNorm + Linear.  LN result is computed once per row tile
    (at column step j == 0) and cached in a bf16 VMEM scratch."""
    @pl.when(pl.program_id(1) == 0)
    def _():
        x = x_ref[...].astype(jnp.float32)
        mean = jnp.mean(x, axis=-1, keepdims=True)
        var = jnp.mean(jnp.square(x - mean), axis=-1, keepdims=True)
        xn = (x - mean) * jax.lax.rsqrt(var + eps) * g_ref[...] + bln_ref[...]
        xn_ref[...] = xn.astype(jnp.bfloat16)

    acc = jnp.dot(xn_ref[...], w_ref[...].astype(jnp.bfloat16),
                  preferred_element_type=jnp.float32)
    o_ref[...] = (acc + b_ref[...]).astype(o_ref.dtype)


def ln_linear(x, g, bln, w, b, eps=1e-6, out_dtype=jnp.bfloat16):
    """Fused pre-LayerNorm + Linear (QKV projection); output in bf16."""
    M, D = x.shape
    N = w.shape[1]
    tm, tn = _row_tile(M), _col_tile(N)
    return pl.pallas_call(
        functools.partial(_ln_linear_kernel, eps=eps),
        out_shape=jax.ShapeDtypeStruct((M, N), out_dtype),
        grid=(pl.cdiv(M, tm), pl.cdiv(N, tn)),
        in_specs=[pl.BlockSpec((tm, D), lambda i, j: (i, 0)),
                  pl.BlockSpec((1, D), lambda i, j: (0, 0)),
                  pl.BlockSpec((1, D), lambda i, j: (0, 0)),
                  pl.BlockSpec((D, tn), lambda i, j: (0, j)),
                  pl.BlockSpec((1, tn), lambda i, j: (0, j))],
        out_specs=pl.BlockSpec((tm, tn), lambda i, j: (i, j)),
        scratch_shapes=[pltpu.VMEM((tm, D), jnp.bfloat16)],
        compiler_params=_compiler_params(("parallel", "arbitrary")),
    )(x, g.reshape(1, D), bln.reshape(1, D), w, b.reshape(1, N))


def _flash_attn_kernel(x_ref, q_ref, k_ref, v_ref, wp_ref, bp_ref, ls_ref,
                       o_ref, m_s, l_s, acc_s, ctx_s,
                       *, n_heads, scale, seq_len, tk):
    """Flash-style MHA + out-proj + LayerScale + residual.

    Grid = (batch, q-tile, head, kv-tile).  Per (batch, q-tile): the per-head
    online-softmax state lives in VMEM scratch; each head's normalized context
    is stored into ctx_s[h]; at the last (head, kv-tile) step one full-depth
    [tq, D] @ [D, D] projection matmul + bias + LayerScale + residual is done.
    """
    h = pl.program_id(2)
    ki = pl.program_id(3)
    nk = pl.num_programs(3)

    @pl.when(ki == 0)
    def _():
        m_s[...] = jnp.full_like(m_s, -jnp.inf)
        l_s[...] = jnp.zeros_like(l_s)
        acc_s[...] = jnp.zeros_like(acc_s)

    q = q_ref[...] * scale                       # scale folded into q (bf16)
    k = k_ref[...]
    v = v_ref[...]
    s = jax.lax.dot_general(q, k, (((1,), (1,)), ((), ())),
                            preferred_element_type=jnp.float32)   # [tq, tk]
    if seq_len % tk != 0:                        # static: mask padded key rows
        col = jax.lax.broadcasted_iota(jnp.int32, s.shape, 1) + ki * tk
        s = jnp.where(col < seq_len, s, -1e30)
        row = jax.lax.broadcasted_iota(jnp.int32, v.shape, 0) + ki * tk
        v = jnp.where(row < seq_len, v, jnp.zeros_like(v))

    m_prev = m_s[...]
    m_new = jnp.maximum(m_prev, jnp.max(s, axis=-1, keepdims=True))
    alpha = jnp.exp(m_prev - m_new)
    p = jnp.exp(s - m_new)
    l_s[...] = alpha * l_s[...] + jnp.sum(p, axis=-1, keepdims=True)
    acc_s[...] = alpha * acc_s[...] + jnp.dot(p.astype(jnp.bfloat16), v,
                                              preferred_element_type=jnp.float32)
    m_s[...] = m_new

    @pl.when(ki == nk - 1)
    def _():
        # Deferred normalization: scale the [tq, Dh] context, not the [tq, tk] probs.
        ctx_s[h] = (acc_s[...] * pl.reciprocal(l_s[...], approx=True)
                    ).astype(jnp.bfloat16)

    @pl.when((h == n_heads - 1) & (ki == nk - 1))
    def _():
        ctx = jnp.concatenate([ctx_s[i] for i in range(n_heads)], axis=-1)  # [tq, D]
        y = jnp.dot(ctx, wp_ref[...], preferred_element_type=jnp.float32) + bp_ref[...]
        o_ref[...] = (x_ref[...].astype(jnp.float32) + ls_ref[...] * y
                      ).astype(o_ref.dtype)


def flash_attn_proj_residual(x_seq, qkv_t, proj_w, proj_b, ls1):
    """x_seq:[B,S,D] f32, qkv_t:[B,3,H,S,Dh] bf16 -> x_seq + ls1 * proj(MHA(qkv))."""
    B, _, H, S, Dh = qkv_t.shape
    D = H * Dh
    scale = Dh ** -0.5
    tq = _seq_tile(S)
    tk = _seq_tile(S)
    kernel = functools.partial(_flash_attn_kernel, n_heads=H, scale=scale,
                               seq_len=S, tk=tk)
    return pl.pallas_call(
        kernel,
        out_shape=jax.ShapeDtypeStruct((B, S, D), jnp.float32),
        grid=(B, pl.cdiv(S, tq), H, pl.cdiv(S, tk)),
        in_specs=[
            pl.BlockSpec((None, tq, D), lambda b, qi, h, ki: (b, qi, 0)),
            pl.BlockSpec((None, None, None, tq, Dh),
                         lambda b, qi, h, ki: (b, 0, h, qi, 0)),
            pl.BlockSpec((None, None, None, tk, Dh),
                         lambda b, qi, h, ki: (b, 1, h, ki, 0)),
            pl.BlockSpec((None, None, None, tk, Dh),
                         lambda b, qi, h, ki: (b, 2, h, ki, 0)),
            pl.BlockSpec((D, D), lambda b, qi, h, ki: (0, 0)),
            pl.BlockSpec((1, D), lambda b, qi, h, ki: (0, 0)),
            pl.BlockSpec((1, D), lambda b, qi, h, ki: (0, 0)),
        ],
        out_specs=pl.BlockSpec((None, tq, D), lambda b, qi, h, ki: (b, qi, 0)),
        scratch_shapes=[pltpu.VMEM((tq, 1), jnp.float32),
                        pltpu.VMEM((tq, 1), jnp.float32),
                        pltpu.VMEM((tq, Dh), jnp.float32),
                        pltpu.VMEM((H, tq, Dh), jnp.bfloat16)],
        compiler_params=_compiler_params(
            ("parallel", "parallel", "arbitrary", "arbitrary")),
    )(x_seq, qkv_t, qkv_t, qkv_t, proj_w, proj_b.reshape(1, D), ls1.reshape(1, D))


def _ln_mlp_kernel(x_ref, g_ref, bln_ref, w1_ref, b1_ref, w2_ref, b2_ref,
                   ls_ref, o_ref, acc_ref, xn_ref, *, eps):
    """Fused LN -> fc1 -> GELU -> fc2 -> LayerScale -> residual.

    Grid = (token tiles, hidden tiles); the hidden axis is a K-tiled reduction
    accumulated in a VMEM f32 scratch, LN result cached in a bf16 scratch."""
    j = pl.program_id(1)

    @pl.when(j == 0)
    def _():
        x = x_ref[...].astype(jnp.float32)
        mean = jnp.mean(x, axis=-1, keepdims=True)
        var = jnp.mean(jnp.square(x - mean), axis=-1, keepdims=True)
        xn = (x - mean) * jax.lax.rsqrt(var + eps) * g_ref[...] + bln_ref[...]
        xn_ref[...] = xn.astype(jnp.bfloat16)
        acc_ref[...] = jnp.zeros_like(acc_ref)

    hmid = jnp.dot(xn_ref[...], w1_ref[...].astype(jnp.bfloat16),
                   preferred_element_type=jnp.float32) + b1_ref[...]
    # TODO(synk): PyTorch nn.GELU default is the exact erf form; the tanh
    # approximation is used here for a Mosaic-safe EUP lowering (~1e-3 diff).
    hmid = jax.nn.gelu(hmid, approximate=True)
    acc_ref[...] += jnp.dot(hmid.astype(jnp.bfloat16),
                            w2_ref[...].astype(jnp.bfloat16),
                            preferred_element_type=jnp.float32)

    @pl.when(j == pl.num_programs(1) - 1)
    def _():
        y = acc_ref[...] + b2_ref[...]
        o_ref[...] = (x_ref[...].astype(jnp.float32)
                      + ls_ref[...] * y).astype(o_ref.dtype)


def ln_mlp_residual(x, ln_g, ln_b, w1, b1, w2, b2, ls, eps=1e-6):
    M, D = x.shape
    Hd = w1.shape[1]
    tm = _row_tile(M)
    th = _red_tile(Hd)
    return pl.pallas_call(
        functools.partial(_ln_mlp_kernel, eps=eps),
        out_shape=jax.ShapeDtypeStruct((M, D), jnp.float32),
        grid=(pl.cdiv(M, tm), Hd // th),
        in_specs=[pl.BlockSpec((tm, D), lambda i, j: (i, 0)),
                  pl.BlockSpec((1, D), lambda i, j: (0, 0)),
                  pl.BlockSpec((1, D), lambda i, j: (0, 0)),
                  pl.BlockSpec((D, th), lambda i, j: (0, j)),
                  pl.BlockSpec((1, th), lambda i, j: (0, j)),
                  pl.BlockSpec((th, D), lambda i, j: (j, 0)),
                  pl.BlockSpec((1, D), lambda i, j: (0, 0)),
                  pl.BlockSpec((1, D), lambda i, j: (0, 0))],
        out_specs=pl.BlockSpec((tm, D), lambda i, j: (i, 0)),
        scratch_shapes=[pltpu.VMEM((tm, D), jnp.float32),
                        pltpu.VMEM((tm, D), jnp.bfloat16)],
        compiler_params=_compiler_params(("parallel", "arbitrary")),
    )(x, ln_g.reshape(1, D), ln_b.reshape(1, D),
      w1, b1.reshape(1, Hd), w2, b2.reshape(1, D), ls.reshape(1, D))


# -------------------------------- Model forward ------------------------------

def dinov2_forward(x, params, cfg):
    """Equivalent of DINOv2Model.forward(x): ViT forward_features + fc head.

    Returns (logits, cls_token_features, patch_token_features); the PyTorch
    default path returns just logits = self.fc(x_norm_clstoken).
    """
    B, C, H, W = x.shape
    P, D, nH = cfg["patch"], cfg["dim"], cfg["heads"]
    Dh = D // nH
    Hp, Wp = H // P, W // P
    N = Hp * Wp
    S = N + 1

    # Patch embedding == Conv2d(C, D, kernel=P, stride=P): extract patches in
    # Conv2d's (c, ph, pw) flattening order and matmul with the weight.
    # TODO(synk): the 6-D reshape/transpose patch extraction still runs in XLA;
    # it could be folded into the kernel with an index_map gather.
    K = C * P * P
    patches = (x.reshape(B, C, Hp, P, Wp, P)
                 .transpose(0, 2, 4, 1, 3, 5)
                 .reshape(B * N, K))
    Kp = params["patch_w"].shape[0]          # K padded to a multiple of 128
    if Kp != K:
        patches = jnp.pad(patches, ((0, 0), (0, Kp - K)))
    tok = linear(patches, params["patch_w"], params["patch_b"]).reshape(B, N, D)

    cls = jnp.broadcast_to(params["cls_token"], (B, 1, D))
    # TODO(synk): DINOv2 interpolates pos_embed for non-pretraining grids; here
    # it is added directly (matches the reference when the grid sizes agree).
    xseq = jnp.concatenate([cls, tok], axis=1) + params["pos_embed"]  # [B,S,D] f32

    for blk in params["blocks"]:
        x2 = xseq.reshape(B * S, D)
        # 1) fused LN1 + QKV projection -> bf16 [B*S, 3D]
        qkv = ln_linear(x2, blk["ln1_g"], blk["ln1_b"],
                        blk["qkv_w"], blk["qkv_b"])
        # head-major layout so per-head Q/K/V tiles are plain BlockSpec blocks
        # TODO(synk): fold this transpose into the QKV kernel's out_spec.
        qkv_t = qkv.reshape(B, S, 3, nH, Dh).transpose(0, 2, 3, 1, 4)
        # 2) flash attention + out-proj + LayerScale + residual
        xseq = flash_attn_proj_residual(xseq, qkv_t, blk["proj_w"],
                                        blk["proj_b"], blk["ls1"])
        # 3) fused LN2 + MLP + LayerScale + residual
        x2 = ln_mlp_residual(xseq.reshape(B * S, D),
                             blk["ln2_g"], blk["ln2_b"],
                             blk["fc1_w"], blk["fc1_b"],
                             blk["fc2_w"], blk["fc2_b"], blk["ls2"])
        xseq = x2.reshape(B, S, D)

    xn = layernorm(xseq.reshape(B * S, D),
                   params["norm_g"], params["norm_b"]).reshape(B, S, D)
    cls_tok = xn[:, 0]       # x_norm_clstoken    [B, D]
    patch_toks = xn[:, 1:]   # x_norm_patchtokens [B, N, D]
    logits = linear(cls_tok, params["fc_w"], params["fc_b"])  # self.fc(features)
    return logits, cls_tok, patch_toks


# --------------------------------- Param init ---------------------------------

def init_params(key, cfg, in_chans=3, img_size=28):
    D, P, depth = cfg["dim"], cfg["patch"], cfg["depth"]
    Hd = cfg["mlp_ratio"] * D
    n_patches = (img_size // P) ** 2
    keys = jax.random.split(key, 8 + depth)

    def nrm(k, shape, scale=0.02):
        return (scale * jax.random.normal(k, shape)).astype(jnp.float32)

    params = {
        "patch_w": nrm(keys[0], (in_chans * P * P, D)),
        "patch_b": jnp.zeros((D,), jnp.float32),
        "cls_token": nrm(keys[1], (1, 1, D)),
        "pos_embed": nrm(keys[2], (1, n_patches + 1, D)),
        "norm_g": jnp.ones((D,), jnp.float32),
        "norm_b": jnp.zeros((D,), jnp.float32),
        "fc_w": nrm(keys[3], (D, cfg["num_classes"])),
        "fc_b": jnp.zeros((cfg["num_classes"],), jnp.float32),
        "blocks": [],
    }
    for i in range(depth):
        bk = jax.random.split(keys[8 + i], 4)
        params["blocks"].append({
            "ln1_g": jnp.ones((D,), jnp.float32),
            "ln1_b": jnp.zeros((D,), jnp.float32),
            "qkv_w": nrm(bk[0], (D, 3 * D)),
            "qkv_b": jnp.zeros((3 * D,), jnp.float32),
            "proj_w": nrm(bk[1], (D, D)),
            "proj_b": jnp.zeros((D,), jnp.float32),
            "ls1": jnp.full((D,), 1e-5, jnp.float32),
            "ln2_g": jnp.ones((D,), jnp.float32),
            "ln2_b": jnp.zeros((D,), jnp.float32),
            "fc1_w": nrm(bk[2], (D, Hd)),
            "fc1_b": jnp.zeros((Hd,), jnp.float32),
            "fc2_w": nrm(bk[3], (Hd, D)),
            "fc2_b": jnp.zeros((D,), jnp.float32),
            "ls2": jnp.full((D,), 1e-5, jnp.float32),
        })
    return params


def prepare_params(params):
    """TPU-friendly params: matmul weights in bf16 (f32 accumulation happens in
    the kernels), LN/bias/LayerScale/pos-embed kept in f32, and the patch-embed
    contraction dim zero-padded to a multiple of 128."""
    bf16 = lambda w: w.astype(jnp.bfloat16)
    K = params["patch_w"].shape[0]
    Kp = ((K + 127) // 128) * 128
    pw = jnp.pad(params["patch_w"], ((0, Kp - K), (0, 0)))
    out = {
        "patch_w": bf16(pw),
        "patch_b": params["patch_b"],
        "cls_token": params["cls_token"],
        "pos_embed": params["pos_embed"],
        "norm_g": params["norm_g"], "norm_b": params["norm_b"],
        "fc_w": bf16(params["fc_w"]), "fc_b": params["fc_b"],
        "blocks": [],
    }
    for blk in params["blocks"]:
        out["blocks"].append({
            "ln1_g": blk["ln1_g"], "ln1_b": blk["ln1_b"],
            "qkv_w": bf16(blk["qkv_w"]), "qkv_b": blk["qkv_b"],
            "proj_w": bf16(blk["proj_w"]), "proj_b": blk["proj_b"],
            "ls1": blk["ls1"],
            "ln2_g": blk["ln2_g"], "ln2_b": blk["ln2_b"],
            "fc1_w": bf16(blk["fc1_w"]), "fc1_b": blk["fc1_b"],
            "fc2_w": bf16(blk["fc2_w"]), "fc2_b": blk["fc2_b"],
            "ls2": blk["ls2"],
        })
    return out


# ------------------------------------ Main ------------------------------------

if __name__ == "__main__":
    # Small synthetic DINOv2-style ViT: patch=14 (as in dinov2_*14), 28x28 image
    # -> 4 patch tokens + 1 cls token, dim=64, 2 heads, depth=2, mlp_ratio=4.
    cfg = dict(patch=14, dim=64, heads=2, depth=2, mlp_ratio=4, num_classes=1)

    key = jax.random.PRNGKey(0)
    kp, kx = jax.random.split(key)
    params = prepare_params(init_params(kp, cfg, in_chans=3, img_size=28))
    x = jax.random.normal(kx, (2, 3, 28, 28), dtype=jnp.float32)  # NCHW

    fwd = jax.jit(lambda x, p: dinov2_forward(x, p, cfg))
    logits, cls_tok, patch_toks = fwd(x, params)
    jax.block_until_ready((logits, cls_tok, patch_toks))

    assert logits.shape == (2, cfg["num_classes"])
    assert cls_tok.shape == (2, cfg["dim"])
    assert patch_toks.shape == (2, 4, cfg["dim"])
    assert bool(jnp.all(jnp.isfinite(logits)))
    print("KERNEL_OK")
</pallas_src>

<mosaic_0001>
module attributes {stable_mosaic.version = 11 : i64} {
  func.func @_linear_kernel(%arg0: i32, %arg1: i32, %arg2: memref<8x640xf32, #tpu.memory_space<vmem>>, %arg3: memref<640x64xbf16, #tpu.memory_space<vmem>>, %arg4: memref<1x64xf32, #tpu.memory_space<vmem>>, %arg5: memref<8x64xf32, #tpu.memory_space<vmem>>) attributes {dimension_semantics = [#tpu.dimension_semantics<parallel>, #tpu.dimension_semantics<parallel>], iteration_bounds = array<i64: 1, 1>, scalar_prefetch = 0 : i64, scratch_operands = 0 : i64, tpu.core_type = #tpu.core_type<tc>, window_params = [{transform_indices = @transform_0, window_bounds = array<i64: 8, 640>}, {transform_indices = @transform_1, window_bounds = array<i64: 640, 64>}, {transform_indices = @transform_2, window_bounds = array<i64: 1, 64>}, {transform_indices = @transform_3, window_bounds = array<i64: 8, 64>}]} {
    %c0 = arith.constant 0 : index
    %c0_0 = arith.constant 0 : index
    %0 = vector.load %arg2[%c0, %c0_0] : memref<8x640xf32, #tpu.memory_space<vmem>>, vector<8x640xf32>
    %1 = arith.truncf %0 : vector<8x640xf32> to vector<8x640xbf16>
    %c0_1 = arith.constant 0 : index
    %c0_2 = arith.constant 0 : index
    %2 = vector.load %arg3[%c0_1, %c0_2] : memref<640x64xbf16, #tpu.memory_space<vmem>>, vector<640x64xbf16>
    %cst = arith.constant dense<0.000000e+00> : vector<8x64xf32>
    %3 = tpu.matmul %1, %2, %cst {dimension_numbers = #tpu.dot_dimension_numbers<[1], [0], [0], [1], [0, 0, 1, 1], [], []>} : vector<8x640xbf16>, vector<640x64xbf16>, vector<8x64xf32> -> vector<8x64xf32>
    %c0_3 = arith.constant 0 : index
    %c0_4 = arith.constant 0 : index
    %4 = vector.load %arg4[%c0_3, %c0_4] : memref<1x64xf32, #tpu.memory_space<vmem>>, vector<1x64xf32>
    %5 = vector.broadcast %4 : vector<1x64xf32> to vector<8x64xf32>
    %6 = arith.addf %3, %5 : vector<8x64xf32>
    %c0_5 = arith.constant 0 : index
    %c0_6 = arith.constant 0 : index
    %7 = vector.load %arg5[%c0_5, %c0_6] : memref<8x64xf32, #tpu.memory_space<vmem>>, vector<8x64xf32>
    tpu.vector_store %arg5[%c0_5, %c0_6], %6 {strides = array<i32>} : memref<8x64xf32, #tpu.memory_space<vmem>>, vector<8x64xf32>,
    return
  }
  func.func @transform_0(%arg0: i32, %arg1: i32) -> (i32, i32) {
    %c0_i32 = arith.constant 0 : i32
    %c0_i32_0 = arith.constant 0 : i32
    return %arg0, %c0_i32 : i32, i32
  }
  func.func @transform_1(%arg0: i32, %arg1: i32) -> (i32, i32) {
    %c0_i32 = arith.constant 0 : i32
    %c0_i32_0 = arith.constant 0 : i32
    return %c0_i32, %arg1 : i32, i32
  }
  func.func @transform_2(%arg0: i32, %arg1: i32) -> (i32, i32) {
    %c0_i32 = arith.constant 0 : i32
    %c0_i32_0 = arith.constant 0 : i32
    return %c0_i32, %arg1 : i32, i32
  }
  func.func @transform_3(%arg0: i32, %arg1: i32) -> (i32, i32) {
    %c0_i32 = arith.constant 0 : i32
    return %arg0, %arg1 : i32, i32
  }
}

module attributes {stable_mosaic.version = 11 : i64} {
  func.func @_ln_linear_kernel(%arg0: i32, %arg1: i32, %arg2: memref<10x64xf32, #tpu.memory_space<vmem>>, %arg3: memref<1x64xf32, #tpu.memory_space<vmem>>, %arg4: memref<1x64xf32, #tpu.memory_space<vmem>>, %arg5: memref<64x192xbf16, #tpu.memory_space<vmem>>, %arg6: memref<1x192xf32, #tpu.memory_space<vmem>>, %arg7: memref<10x192xbf16, #tpu.memory_space<vmem>>, %arg8: memref<10x64xbf16, #tpu.memory_space<vmem>>) attributes {dimension_semantics = [#tpu.dimension_semantics<parallel>, #tpu.dimension_semantics<arbitrary>], iteration_bounds = array<i64: 1, 1>, scalar_prefetch = 0 : i64, scratch_operands = 1 : i64, tpu.core_type = #tpu.core_type<tc>, window_params = [{transform_indices = @transform_0, window_bounds = array<i64: 10, 64>}, {pipeline_mode = #tpu.pipeline_mode<synchronous>, transform_indices = @transform_1, window_bounds = array<i64: 1, 64>}, {pipeline_mode = #tpu.pipeline_mode<synchronous>, transform_indices = @transform_2, window_bounds = array<i64: 1, 64>}, {transform_indices = @transform_3, window_bounds = array<i64: 64, 192>}, {transform_indices = @transform_4, window_bounds = array<i64: 1, 192>}, {transform_indices = @transform_5, window_bounds = array<i64: 10, 192>}]} {
    %c0_i32 = arith.constant 0 : i32
    %0 = arith.cmpi eq, %arg1, %c0_i32 : i32
    %1 = arith.extui %0 : i1 to i32
    %c0_i32_0 = arith.constant 0 : i32
    %2 = arith.cmpi ne, %1, %c0_i32_0 : i32
    scf.if %2 {
      %c0_8 = arith.constant 0 : index
      %c0_9 = arith.constant 0 : index
      %11 = vector.load %arg2[%c0_8, %c0_9] : memref<10x64xf32, #tpu.memory_space<vmem>>, vector<10x64xf32>
      %cst_10 = arith.constant dense<0.000000e+00> : vector<10xf32>
      %12 = vector.multi_reduction <add>, %11, %cst_10 [1] : vector<10x64xf32> to vector<10xf32>
      %13 = vector.shape_cast %12 : vector<10xf32> to vector<10x1xf32>
      %cst_11 = arith.constant 6.400000e+01 : f32
      %14 = vector.broadcast %cst_11 : f32 to vector<10x1xf32>
      %15 = arith.divf %13, %14 : vector<10x1xf32>
      %16 = vector.broadcast %15 : vector<10x1xf32> to vector<10x64xf32>
      %17 = arith.subf %11, %16 : vector<10x64xf32>
      %18 = arith.mulf %17, %17 : vector<10x64xf32>
      %cst_12 = arith.constant dense<0.000000e+00> : vector<10xf32>
      %19 = vector.multi_reduction <add>, %18, %cst_12 [1] : vector<10x64xf32> to vector<10xf32>
      %20 = vector.shape_cast %19 : vector<10xf32> to vector<10x1xf32>
      %cst_13 = arith.constant 6.400000e+01 : f32
      %21 = vector.broadcast %cst_13 : f32 to vector<10x1xf32>
      %22 = arith.divf %20, %21 : vector<10x1xf32>
      %23 = vector.broadcast %15 : vector<10x1xf32> to vector<10x64xf32>
      %24 = arith.subf %11, %23 : vector<10x64xf32>
      %cst_14 = arith.constant 9.99999997E-7 : f32
      %25 = vector.broadcast %cst_14 : f32 to vector<10x1xf32>
      %26 = arith.addf %22, %25 : vector<10x1xf32>
      %27 = math.rsqrt %26 : vector<10x1xf32>
      %28 = vector.broadcast %27 : vector<10x1xf32> to vector<10x64xf32>
      %29 = arith.mulf %24, %28 : vector<10x64xf32>
      %c0_15 = arith.constant 0 : index
      %c0_16 = arith.constant 0 : index
      %30 = vector.load %arg3[%c0_15, %c0_16] : memref<1x64xf32, #tpu.memory_space<vmem>>, vector<1x64xf32>
      %31 = vector.broadcast %30 : vector<1x64xf32> to vector<10x64xf32>
      %32 = arith.mulf %29, %31 : vector<10x64xf32>
      %c0_17 = arith.constant 0 : index
      %c0_18 = arith.constant 0 : index
      %33 = vector.load %arg4[%c0_17, %c0_18] : memref<1x64xf32, #tpu.memory_space<vmem>>, vector<1x64xf32>
      %34 = vector.broadcast %33 : vector<1x64xf32> to vector<10x64xf32>
      %35 = arith.addf %32, %34 : vector<10x64xf32>
      %36 = arith.truncf %35 : vector<10x64xf32> to vector<10x64xbf16>
      %c0_19 = arith.constant 0 : index
      %c0_20 = arith.constant 0 : index
      %37 = vector.load %arg8[%c0_19, %c0_20] : memref<10x64xbf16, #tpu.memory_space<vmem>>, vector<10x64xbf16>
      tpu.vector_store %arg8[%c0_19, %c0_20], %36 {strides = array<i32>} : memref<10x64xbf16, #tpu.memory_space<vmem>>, vector<10x64xbf16>,
    } else {
    }
    %c0 = arith.constant 0 : index
    %c0_1 = arith.constant 0 : index
    %3 = vector.load %arg8[%c0, %c0_1] : memref<10x64xbf16, #tpu.memory_space<vmem>>, vector<10x64xbf16>
    %c0_2 = arith.constant 0 : index
    %c0_3 = arith.constant 0 : index
    %4 = vector.load %arg5[%c0_2, %c0_3] : memref<64x192xbf16, #tpu.memory_space<vmem>>, vector<64x192xbf16>
    %cst = arith.constant dense<0.000000e+00> : vector<10x192xf32>
    %5 = tpu.matmul %3, %4, %cst {dimension_numbers = #tpu.dot_dimension_numbers<[1], [0], [0], [1], [0, 0, 1, 1], [], []>} : vector<10x64xbf16>, vector<64x192xbf16>, vector<10x192xf32> -> vector<10x192xf32>
    %c0_4 = arith.constant 0 : index
    %c0_5 = arith.constant 0 : index
    %6 = vector.load %arg6[%c0_4, %c0_5] : memref<1x192xf32, #tpu.memory_space<vmem>>, vector<1x192xf32>
    %7 = vector.broadcast %6 : vector<1x192xf32> to vector<10x192xf32>
    %8 = arith.addf %5, %7 : vector<10x192xf32>
    %9 = arith.truncf %8 : vector<10x192xf32> to vector<10x192xbf16>
    %c0_6 = arith.constant 0 : index
    %c0_7 = arith.constant 0 : index
    %10 = vector.load %arg7[%c0_6, %c0_7] : memref<10x192xbf16, #tpu.memory_space<vmem>>, vector<10x192xbf16>
    tpu.vector_store %arg7[%c0_6, %c0_7], %9 {strides = array<i32>} : memref<10x192xbf16, #tpu.memory_space<vmem>>, vector<10x192xbf16>,
    return
  }
  func.func @transform_0(%arg0: i32, %arg1: i32) -> (i32, i32) {
    %c0_i32 = arith.constant 0 : i32
    %c0_i32_0 = arith.constant 0 : i32
    return %arg0, %c0_i32 : i32, i32
  }
  func.func @transform_1(%arg0: i32, %arg1: i32) -> (i32, i32) {
    %c0_i32 = arith.constant 0 : i32
    %c0_i32_0 = arith.constant 0 : i32
    %c0_i32_1 = arith.constant 0 : i32
    return %c0_i32, %c0_i32_0 : i32, i32
  }
  func.func @transform_2(%arg0: i32, %arg1: i32) -> (i32, i32) {
    %c0_i32 = arith.constant 0 : i32
    %c0_i32_0 = arith.constant 0 : i32
    %c0_i32_1 = arith.constant 0 : i32
    return %c0_i32, %c0_i32_0 : i32, i32
  }
  func.func @transform_3(%arg0: i32, %arg1: i32) -> (i32, i32) {
    %c0_i32 = arith.constant 0 : i32
    %c0_i32_0 = arith.constant 0 : i32
    return %c0_i32, %arg1 : i32, i32
  }
  func.func @transform_4(%arg0: i32, %arg1: i32) -> (i32, i32) {
    %c0_i32 = arith.constant 0 : i32
    %c0_i32_0 = arith.constant 0 : i32
    return %c0_i32, %arg1 : i32, i32
  }
  func.func @transform_5(%arg0: i32, %arg1: i32) -> (i32, i32) {
    %c0_i32 = arith.constant 0 : i32
    return %arg0, %arg1 : i32, i32
  }
}

module attributes {stable_mosaic.version = 11 : i64} {
  func.func @_flash_attn_kernel(%arg0: i32, %arg1: i32, %arg2: i32, %arg3: i32, %arg4: memref<1x5x64xf32, #tpu.memory_space<vmem>>, %arg5: memref<1x1x1x5x32xbf16, #tpu.memory_space<vmem>>, %arg6: memref<1x1x1x5x32xbf16, #tpu.memory_space<vmem>>, %arg7: memref<1x1x1x5x32xbf16, #tpu.memory_space<vmem>>, %arg8: memref<64x64xbf16, #tpu.memory_space<vmem>>, %arg9: memref<1x64xf32, #tpu.memory_space<vmem>>, %arg10: memref<1x64xf32, #tpu.memory_space<vmem>>, %arg11: memref<1x5x64xf32, #tpu.memory_space<vmem>>, %arg12: memref<5x1xf32, #tpu.memory_space<vmem>>, %arg13: memref<5x1xf32, #tpu.memory_space<vmem>>, %arg14: memref<5x32xf32, #tpu.memory_space<vmem>>, %arg15: memref<2x5x32xbf16, #tpu.memory_space<vmem>>) attributes {dimension_semantics = [#tpu.dimension_semantics<parallel>, #tpu.dimension_semantics<parallel>, #tpu.dimension_semantics<arbitrary>, #tpu.dimension_semantics<arbitrary>], iteration_bounds = array<i64: 2, 1, 2, 1>, scalar_prefetch = 0 : i64, scratch_operands = 4 : i64, tpu.core_type = #tpu.core_type<tc>, window_params = [{transform_indices = @transform_0, window_bounds = array<i64: 1, 5, 64>}, {transform_indices = @transform_1, window_bounds = array<i64: 1, 1, 1, 5, 32>}, {transform_indices = @transform_2, window_bounds = array<i64: 1, 1, 1, 5, 32>}, {transform_indices = @transform_3, window_bounds = array<i64: 1, 1, 1, 5, 32>}, {pipeline_mode = #tpu.pipeline_mode<synchronous>, transform_indices = @transform_4, window_bounds = array<i64: 64, 64>}, {pipeline_mode = #tpu.pipeline_mode<synchronous>, transform_indices = @transform_5, window_bounds = array<i64: 1, 64>}, {pipeline_mode = #tpu.pipeline_mode<synchronous>, transform_indices = @transform_6, window_bounds = array<i64: 1, 64>}, {transform_indices = @transform_7, window_bounds = array<i64: 1, 5, 64>}]} {
    %c0_i32 = arith.constant 0 : i32
    %0 = arith.cmpi eq, %arg3, %c0_i32 : i32
    %1 = arith.extui %0 : i1 to i32
    %c0_i32_0 = arith.constant 0 : i32
    %2 = arith.cmpi ne, %1, %c0_i32_0 : i32
    scf.if %2 {
      %cst_35 = arith.constant 0xFF800000 : f32
      %43 = vector.broadcast %cst_35 : f32 to vector<5x1xf32>
      %c0_36 = arith.constant 0 : index
      %c0_37 = arith.constant 0 : index
      %44 = vector.load %arg12[%c0_36, %c0_37] : memref<5x1xf32, #tpu.memory_space<vmem>>, vector<5x1xf32>
      tpu.vector_store %arg12[%c0_36, %c0_37], %43 {strides = array<i32>} : memref<5x1xf32, #tpu.memory_space<vmem>>, vector<5x1xf32>,
      %cst_38 = arith.constant 0.000000e+00 : f32
      %45 = vector.broadcast %cst_38 : f32 to vector<5x1xf32>
      %c0_39 = arith.constant 0 : index
      %c0_40 = arith.constant 0 : index
      %46 = vector.load %arg13[%c0_39, %c0_40] : memref<5x1xf32, #tpu.memory_space<vmem>>, vector<5x1xf32>
      tpu.vector_store %arg13[%c0_39, %c0_40], %45 {strides = array<i32>} : memref<5x1xf32, #tpu.memory_space<vmem>>, vector<5x1xf32>,
      %cst_41 = arith.constant 0.000000e+00 : f32
      %47 = vector.broadcast %cst_41 : f32 to vector<5x32xf32>
      %c0_42 = arith.constant 0 : index
      %c0_43 = arith.constant 0 : index
      %48 = vector.load %arg14[%c0_42, %c0_43] : memref<5x32xf32, #tpu.memory_space<vmem>>, vector<5x32xf32>
      tpu.vector_store %arg14[%c0_42, %c0_43], %47 {strides = array<i32>} : memref<5x32xf32, #tpu.memory_space<vmem>>, vector<5x32xf32>,
    } else {
    }
    %c0 = arith.constant 0 : index
    %c0_1 = arith.constant 0 : index
    %c0_2 = arith.constant 0 : index
    %c0_3 = arith.constant 0 : index
    %c0_4 = arith.constant 0 : index
    %3 = vector.load %arg5[%c0, %c0_1, %c0_2, %c0_3, %c0_4] : memref<1x1x1x5x32xbf16, #tpu.memory_space<vmem>>, vector<1x1x1x5x32xbf16>
    %4 = vector.shape_cast %3 : vector<1x1x1x5x32xbf16> to vector<5x32xbf16>
    %cst = arith.constant 1.767580e-01 : bf16
    %5 = vector.broadcast %cst : bf16 to vector<5x32xbf16>
    %6 = arith.mulf %4, %5 : vector<5x32xbf16>
    %c0_5 = arith.constant 0 : index
    %c0_6 = arith.constant 0 : index
    %c0_7 = arith.constant 0 : index
    %c0_8 = arith.constant 0 : index
    %c0_9 = arith.constant 0 : index
    %7 = vector.load %arg6[%c0_5, %c0_6, %c0_7, %c0_8, %c0_9] : memref<1x1x1x5x32xbf16, #tpu.memory_space<vmem>>, vector<1x1x1x5x32xbf16>
    %8 = vector.shape_cast %7 : vector<1x1x1x5x32xbf16> to vector<5x32xbf16>
    %c0_10 = arith.constant 0 : index
    %c0_11 = arith.constant 0 : index
    %c0_12 = arith.constant 0 : index
    %c0_13 = arith.constant 0 : index
    %c0_14 = arith.constant 0 : index
    %9 = vector.load %arg7[%c0_10, %c0_11, %c0_12, %c0_13, %c0_14] : memref<1x1x1x5x32xbf16, #tpu.memory_space<vmem>>, vector<1x1x1x5x32xbf16>
    %10 = vector.shape_cast %9 : vector<1x1x1x5x32xbf16> to vector<5x32xbf16>
    %cst_15 = arith.constant dense<0.000000e+00> : vector<5x5xf32>
    %11 = tpu.matmul %6, %8, %cst_15 {dimension_numbers = #tpu.dot_dimension_numbers<[1], [1], [0], [0], [0, 0, 1, 0], [], []>} : vector<5x32xbf16>, vector<5x32xbf16>, vector<5x5xf32> -> vector<5x5xf32>
    %c0_16 = arith.constant 0 : index
    %c0_17 = arith.constant 0 : index
    %12 = vector.load %arg12[%c0_16, %c0_17] : memref<5x1xf32, #tpu.memory_space<vmem>>, vector<5x1xf32>
    %cst_18 = arith.constant dense<0xFF800000> : vector<5xf32>
    %13 = vector.multi_reduction <maximumf>, %11, %cst_18 [1] : vector<5x5xf32> to vector<5xf32>
    %14 = vector.shape_cast %13 : vector<5xf32> to vector<5x1xf32>
    %15 = arith.maximumf %12, %14 : vector<5x1xf32>
    %16 = arith.subf %12, %15 : vector<5x1xf32>
    %17 = math.exp %16 : vector<5x1xf32>
    %18 = vector.broadcast %15 : vector<5x1xf32> to vector<5x5xf32>
    %19 = arith.subf %11, %18 : vector<5x5xf32>
    %20 = math.exp %19 : vector<5x5xf32>
    %c0_19 = arith.constant 0 : index
    %c0_20 = arith.constant 0 : index
    %21 = vector.load %arg13[%c0_19, %c0_20] : memref<5x1xf32, #tpu.memory_space<vmem>>, vector<5x1xf32>
    %22 = arith.mulf %17, %21 : vector<5x1xf32>
    %cst_21 = arith.constant dense<0.000000e+00> : vector<5xf32>
    %23 = vector.multi_reduction <add>, %20, %cst_21 [1] : vector<5x5xf32> to vector<5xf32>
    %24 = vector.shape_cast %23 : vector<5xf32> to vector<5x1xf32>
    %25 = arith.addf %22, %24 : vector<5x1xf32>
    %c0_22 = arith.constant 0 : index
    %c0_23 = arith.constant 0 : index
    %26 = vector.load %arg13[%c0_22, %c0_23] : memref<5x1xf32, #tpu.memory_space<vmem>>, vector<5x1xf32>
    tpu.vector_store %arg13[%c0_22, %c0_23], %25 {strides = array<i32>} : memref<5x1xf32, #tpu.memory_space<vmem>>, vector<5x1xf32>,
    %c0_24 = arith.constant 0 : index
    %c0_25 = arith.constant 0 : index
    %27 = vector.load %arg14[%c0_24, %c0_25] : memref<5x32xf32, #tpu.memory_space<vmem>>, vector<5x32xf32>
    %28 = vector.broadcast %17 : vector<5x1xf32> to vector<5x32xf32>
    %29 = arith.mulf %28, %27 : vector<5x32xf32>
    %30 = arith.truncf %20 : vector<5x5xf32> to vector<5x5xbf16>
    %cst_26 = arith.constant dense<0.000000e+00> : vector<5x32xf32>
    %31 = tpu.matmul %30, %10, %cst_26 {dimension_numbers = #tpu.dot_dimension_numbers<[1], [0], [0], [1], [0, 0, 1, 1], [], []>} : vector<5x5xbf16>, vector<5x32xbf16>, vector<5x32xf32> -> vector<5x32xf32>
    %32 = arith.addf %29, %31 : vector<5x32xf32>
    %c0_27 = arith.constant 0 : index
    %c0_28 = arith.constant 0 : index
    %33 = vector.load %arg14[%c0_27, %c0_28] : memref<5x32xf32, #tpu.memory_space<vmem>>, vector<5x32xf32>
    tpu.vector_store %arg14[%c0_27, %c0_28], %32 {strides = array<i32>} : memref<5x32xf32, #tpu.memory_space<vmem>>, vector<5x32xf32>,
    %c0_29 = arith.constant 0 : index
    %c0_30 = arith.constant 0 : index
    %34 = vector.load %arg12[%c0_29, %c0_30] : memref<5x1xf32, #tpu.memory_space<vmem>>, vector<5x1xf32>
    tpu.vector_store %arg12[%c0_29, %c0_30], %15 {strides = array<i32>} : memref<5x1xf32, #tpu.memory_space<vmem>>, vector<5x1xf32>,
    %c0_i32_31 = arith.constant 0 : i32
    %35 = arith.cmpi eq, %arg3, %c0_i32_31 : i32
    %36 = arith.extui %35 : i1 to i32
    %c0_i32_32 = arith.constant 0 : i32
    %37 = arith.cmpi ne, %36, %c0_i32_32 : i32
    scf.if %37 {
      %c0_35 = arith.constant 0 : index
      %c0_36 = arith.constant 0 : index
      %43 = vector.load %arg14[%c0_35, %c0_36] : memref<5x32xf32, #tpu.memory_space<vmem>>, vector<5x32xf32>
      %c0_37 = arith.constant 0 : index
      %c0_38 = arith.constant 0 : index
      %44 = vector.load %arg13[%c0_37, %c0_38] : memref<5x1xf32, #tpu.memory_space<vmem>>, vector<5x1xf32>
      %45 = tpu.reciprocal %44 {approx = true} : vector<5x1xf32> -> vector<5x1xf32>
      %46 = vector.broadcast %45 : vector<5x1xf32> to vector<5x32xf32>
      %47 = arith.mulf %43, %46 : vector<5x32xf32>
      %48 = arith.truncf %47 : vector<5x32xf32> to vector<5x32xbf16>
      %49 = arith.index_cast %arg2 : i32 to index
      %c0_39 = arith.constant 0 : index
      %c0_40 = arith.constant 0 : index
      %50 = vector.load %arg15[%49, %c0_39, %c0_40] : memref<2x5x32xbf16, #tpu.memory_space<vmem>>, vector<1x5x32xbf16>
      %51 = vector.shape_cast %50 : vector<1x5x32xbf16> to vector<5x32xbf16>
      %52 = vector.shape_cast %48 : vector<5x32xbf16> to vector<1x5x32xbf16>
      tpu.vector_store %arg15[%49, %c0_39, %c0_40], %52 {strides = array<i32>} : memref<2x5x32xbf16, #tpu.memory_space<vmem>>, vector<1x5x32xbf16>,
    } else {
    }
    %c1_i32 = arith.constant 1 : i32
    %38 = arith.cmpi eq, %arg2, %c1_i32 : i32
    %c0_i32_33 = arith.constant 0 : i32
    %39 = arith.cmpi eq, %arg3, %c0_i32_33 : i32
    %40 = arith.andi %38, %39 : i1
    %41 = arith.extui %40 : i1 to i32
    %c0_i32_34 = arith.constant 0 : i32
    %42 = arith.cmpi ne, %41, %c0_i32_34 : i32
    scf.if %42 {
      %c0_35 = arith.constant 0 : index
      %c0_36 = arith.constant 0 : index
      %c0_37 = arith.constant 0 : index
      %43 = vector.load %arg15[%c0_35, %c0_36, %c0_37] : memref<2x5x32xbf16, #tpu.memory_space<vmem>>, vector<1x5x32xbf16>
      %44 = vector.shape_cast %43 : vector<1x5x32xbf16> to vector<5x32xbf16>
      %c1 = arith.constant 1 : index
      %c0_38 = arith.constant 0 : index
      %c0_39 = arith.constant 0 : index
      %45 = vector.load %arg15[%c1, %c0_38, %c0_39] : memref<2x5x32xbf16, #tpu.memory_space<vmem>>, vector<1x5x32xbf16>
      %46 = vector.shape_cast %45 : vector<1x5x32xbf16> to vector<5x32xbf16>
      %47 = tpu.concatenate %44, %46 in 1 : vector<5x32xbf16>, vector<5x32xbf16> -> vector<5x64xbf16>
      %c0_40 = arith.constant 0 : index
      %c0_41 = arith.constant 0 : index
      %48 = vector.load %arg8[%c0_40, %c0_41] : memref<64x64xbf16, #tpu.memory_space<vmem>>, vector<64x64xbf16>
      %cst_42 = arith.constant dense<0.000000e+00> : vector<5x64xf32>
      %49 = tpu.matmul %47, %48, %cst_42 {dimension_numbers = #tpu.dot_dimension_numbers<[1], [0], [0], [1], [0, 0, 1, 1], [], []>} : vector<5x64xbf16>, vector<64x64xbf16>, vector<5x64xf32> -> vector<5x64xf32>
      %c0_43 = arith.constant 0 : index
      %c0_44 = arith.constant 0 : index
      %50 = vector.load %arg9[%c0_43, %c0_44] : memref<1x64xf32, #tpu.memory_space<vmem>>, vector<1x64xf32>
      %51 = vector.broadcast %50 : vector<1x64xf32> to vector<5x64xf32>
      %52 = arith.addf %49, %51 : vector<5x64xf32>
      %c0_45 = arith.constant 0 : index
      %c0_46 = arith.constant 0 : index
      %c0_47 = arith.constant 0 : index
      %53 = vector.load %arg4[%c0_45, %c0_46, %c0_47] : memref<1x5x64xf32, #tpu.memory_space<vmem>>, vector<1x5x64xf32>
      %54 = vector.shape_cast %53 : vector<1x5x64xf32> to vector<5x64xf32>
      %c0_48 = arith.constant 0 : index
      %c0_49 = arith.constant 0 : index
      %55 = vector.load %arg10[%c0_48, %c0_49] : memref<1x64xf32, #tpu.memory_space<vmem>>, vector<1x64xf32>
      %56 = vector.broadcast %55 : vector<1x64xf32> to vector<5x64xf32>
      %57 = arith.mulf %56, %52 : vector<5x64xf32>
      %58 = arith.addf %54, %57 : vector<5x64xf32>
      %c0_50 = arith.constant 0 : index
      %c0_51 = arith.constant 0 : index
      %c0_52 = arith.constant 0 : index
      %59 = vector.load %arg11[%c0_50, %c0_51, %c0_52] : memref<1x5x64xf32, #tpu.memory_space<vmem>>, vector<1x5x64xf32>
      %60 = vector.shape_cast %59 : vector<1x5x64xf32> to vector<5x64xf32>
      %61 = vector.shape_cast %58 : vector<5x64xf32> to vector<1x5x64xf32>
      tpu.vector_store %arg11[%c0_50, %c0_51, %c0_52], %61 {strides = array<i32>} : memref<1x5x64xf32, #tpu.memory_space<vmem>>, vector<1x5x64xf32>,
    } else {
    }
    return
  }
  func.func @transform_0(%arg0: i32, %arg1: i32, %arg2: i32, %arg3: i32) -> (i32, i32, i32) {
    %c0_i32 = arith.constant 0 : i32
    %c0_i32_0 = arith.constant 0 : i32
    return %arg0, %arg1, %c0_i32 : i32, i32, i32
  }
  func.func @transform_1(%arg0: i32, %arg1: i32, %arg2: i32, %arg3: i32) -> (i32, i32, i32, i32, i32) {
    %c0_i32 = arith.constant 0 : i32
    %c0_i32_0 = arith.constant 0 : i32
    %c0_i32_1 = arith.constant 0 : i32
    return %arg0, %c0_i32, %arg2, %arg1, %c0_i32_0 : i32, i32, i32, i32, i32
  }
  func.func @transform_2(%arg0: i32, %arg1: i32, %arg2: i32, %arg3: i32) -> (i32, i32, i32, i32, i32) {
    %c1_i32 = arith.constant 1 : i32
    %c0_i32 = arith.constant 0 : i32
    %c0_i32_0 = arith.constant 0 : i32
    return %arg0, %c1_i32, %arg2, %arg3, %c0_i32 : i32, i32, i32, i32, i32
  }
  func.func @transform_3(%arg0: i32, %arg1: i32, %arg2: i32, %arg3: i32) -> (i32, i32, i32, i32, i32) {
    %c2_i32 = arith.constant 2 : i32
    %c0_i32 = arith.constant 0 : i32
    %c0_i32_0 = arith.constant 0 : i32
    return %arg0, %c2_i32, %arg2, %arg3, %c0_i32 : i32, i32, i32, i32, i32
  }
  func.func @transform_4(%arg0: i32, %arg1: i32, %arg2: i32, %arg3: i32) -> (i32, i32) {
    %c0_i32 = arith.constant 0 : i32
    %c0_i32_0 = arith.constant 0 : i32
    %c0_i32_1 = arith.constant 0 : i32
    return %c0_i32, %c0_i32_0 : i32, i32
  }
  func.func @transform_5(%arg0: i32, %arg1: i32, %arg2: i32, %arg3: i32) -> (i32, i32) {
    %c0_i32 = arith.constant 0 : i32
    %c0_i32_0 = arith.constant 0 : i32
    %c0_i32_1 = arith.constant 0 : i32
    return %c0_i32, %c0_i32_0 : i32, i32
  }
  func.func @transform_6(%arg0: i32, %arg1: i32, %arg2: i32, %arg3: i32) -> (i32, i32) {
    %c0_i32 = arith.constant 0 : i32
    %c0_i32_0 = arith.constant 0 : i32
    %c0_i32_1 = arith.constant 0 : i32
    return %c0_i32, %c0_i32_0 : i32, i32
  }
  func.func @transform_7(%arg0: i32, %arg1: i32, %arg2: i32, %arg3: i32) -> (i32, i32, i32) {
    %c0_i32 = arith.constant 0 : i32
    %c0_i32_0 = arith.constant 0 : i32
    return %arg0, %arg1, %c0_i32 : i32, i32, i32
  }
}

module attributes {stable_mosaic.version = 11 : i64} {
  func.func @_ln_mlp_kernel(%arg0: i32, %arg1: i32, %arg2: memref<10x64xf32, #tpu.memory_space<vmem>>, %arg3: memref<1x64xf32, #tpu.memory_space<vmem>>, %arg4: memref<1x64xf32, #tpu.memory_space<vmem>>, %arg5: memref<64x256xbf16, #tpu.memory_space<vmem>>, %arg6: memref<1x256xf32, #tpu.memory_space<vmem>>, %arg7: memref<256x64xbf16, #tpu.memory_space<vmem>>, %arg8: memref<1x64xf32, #tpu.memory_space<vmem>>, %arg9: memref<1x64xf32, #tpu.memory_space<vmem>>, %arg10: memref<10x64xf32, #tpu.memory_space<vmem>>, %arg11: memref<10x64xf32, #tpu.memory_space<vmem>>, %arg12: memref<10x64xbf16, #tpu.memory_space<vmem>>) attributes {dimension_semantics = [#tpu.dimension_semantics<parallel>, #tpu.dimension_semantics<arbitrary>], iteration_bounds = array<i64: 1, 1>, scalar_prefetch = 0 : i64, scratch_operands = 2 : i64, tpu.core_type = #tpu.core_type<tc>, window_params = [{transform_indices = @transform_0, window_bounds = array<i64: 10, 64>}, {pipeline_mode = #tpu.pipeline_mode<synchronous>, transform_indices = @transform_1, window_bounds = array<i64: 1, 64>}, {pipeline_mode = #tpu.pipeline_mode<synchronous>, transform_indices = @transform_2, window_bounds = array<i64: 1, 64>}, {transform_indices = @transform_3, window_bounds = array<i64: 64, 256>}, {transform_indices = @transform_4, window_bounds = array<i64: 1, 256>}, {transform_indices = @transform_5, window_bounds = array<i64: 256, 64>}, {pipeline_mode = #tpu.pipeline_mode<synchronous>, transform_indices = @transform_6, window_bounds = array<i64: 1, 64>}, {pipeline_mode = #tpu.pipeline_mode<synchronous>, transform_indices = @transform_7, window_bounds = array<i64: 1, 64>}, {transform_indices = @transform_8, window_bounds = array<i64: 10, 64>}]} {
    %c0_i32 = arith.constant 0 : i32
    %0 = arith.cmpi eq, %arg1, %c0_i32 : i32
    %1 = arith.extui %0 : i1 to i32
    %c0_i32_0 = arith.constant 0 : i32
    %2 = arith.cmpi ne, %1, %c0_i32_0 : i32
    scf.if %2 {
      %c0_19 = arith.constant 0 : index
      %c0_20 = arith.constant 0 : index
      %31 = vector.load %arg2[%c0_19, %c0_20] : memref<10x64xf32, #tpu.memory_space<vmem>>, vector<10x64xf32>
      %cst_21 = arith.constant dense<0.000000e+00> : vector<10xf32>
      %32 = vector.multi_reduction <add>, %31, %cst_21 [1] : vector<10x64xf32> to vector<10xf32>
      %33 = vector.shape_cast %32 : vector<10xf32> to vector<10x1xf32>
      %cst_22 = arith.constant 6.400000e+01 : f32
      %34 = vector.broadcast %cst_22 : f32 to vector<10x1xf32>
      %35 = arith.divf %33, %34 : vector<10x1xf32>
      %36 = vector.broadcast %35 : vector<10x1xf32> to vector<10x64xf32>
      %37 = arith.subf %31, %36 : vector<10x64xf32>
      %38 = arith.mulf %37, %37 : vector<10x64xf32>
      %cst_23 = arith.constant dense<0.000000e+00> : vector<10xf32>
      %39 = vector.multi_reduction <add>, %38, %cst_23 [1] : vector<10x64xf32> to vector<10xf32>
      %40 = vector.shape_cast %39 : vector<10xf32> to vector<10x1xf32>
      %cst_24 = arith.constant 6.400000e+01 : f32
      %41 = vector.broadcast %cst_24 : f32 to vector<10x1xf32>
      %42 = arith.divf %40, %41 : vector<10x1xf32>
      %43 = vector.broadcast %35 : vector<10x1xf32> to vector<10x64xf32>
      %44 = arith.subf %31, %43 : vector<10x64xf32>
      %cst_25 = arith.constant 9.99999997E-7 : f32
      %45 = vector.broadcast %cst_25 : f32 to vector<10x1xf32>
      %46 = arith.addf %42, %45 : vector<10x1xf32>
      %47 = math.rsqrt %46 : vector<10x1xf32>
      %48 = vector.broadcast %47 : vector<10x1xf32> to vector<10x64xf32>
      %49 = arith.mulf %44, %48 : vector<10x64xf32>
      %c0_26 = arith.constant 0 : index
      %c0_27 = arith.constant 0 : index
      %50 = vector.load %arg3[%c0_26, %c0_27] : memref<1x64xf32, #tpu.memory_space<vmem>>, vector<1x64xf32>
      %51 = vector.broadcast %50 : vector<1x64xf32> to vector<10x64xf32>
      %52 = arith.mulf %49, %51 : vector<10x64xf32>
      %c0_28 = arith.constant 0 : index
      %c0_29 = arith.constant 0 : index
      %53 = vector.load %arg4[%c0_28, %c0_29] : memref<1x64xf32, #tpu.memory_space<vmem>>, vector<1x64xf32>
      %54 = vector.broadcast %53 : vector<1x64xf32> to vector<10x64xf32>
      %55 = arith.addf %52, %54 : vector<10x64xf32>
      %56 = arith.truncf %55 : vector<10x64xf32> to vector<10x64xbf16>
      %c0_30 = arith.constant 0 : index
      %c0_31 = arith.constant 0 : index
      %57 = vector.load %arg12[%c0_30, %c0_31] : memref<10x64xbf16, #tpu.memory_space<vmem>>, vector<10x64xbf16>
      tpu.vector_store %arg12[%c0_30, %c0_31], %56 {strides = array<i32>} : memref<10x64xbf16, #tpu.memory_space<vmem>>, vector<10x64xbf16>,
      %cst_32 = arith.constant 0.000000e+00 : f32
      %58 = vector.broadcast %cst_32 : f32 to vector<10x64xf32>
      %c0_33 = arith.constant 0 : index
      %c0_34 = arith.constant 0 : index
      %59 = vector.load %arg11[%c0_33, %c0_34] : memref<10x64xf32, #tpu.memory_space<vmem>>, vector<10x64xf32>
      tpu.vector_store %arg11[%c0_33, %c0_34], %58 {strides = array<i32>} : memref<10x64xf32, #tpu.memory_space<vmem>>, vector<10x64xf32>,
    } else {
    }
    %c0 = arith.constant 0 : index
    %c0_1 = arith.constant 0 : index
    %3 = vector.load %arg12[%c0, %c0_1] : memref<10x64xbf16, #tpu.memory_space<vmem>>, vector<10x64xbf16>
    %c0_2 = arith.constant 0 : index
    %c0_3 = arith.constant 0 : index
    %4 = vector.load %arg5[%c0_2, %c0_3] : memref<64x256xbf16, #tpu.memory_space<vmem>>, vector<64x256xbf16>
    %cst = arith.constant dense<0.000000e+00> : vector<10x256xf32>
    %5 = tpu.matmul %3, %4, %cst {dimension_numbers = #tpu.dot_dimension_numbers<[1], [0], [0], [1], [0, 0, 1, 1], [], []>} : vector<10x64xbf16>, vector<64x256xbf16>, vector<10x256xf32> -> vector<10x256xf32>
    %c0_4 = arith.constant 0 : index
    %c0_5 = arith.constant 0 : index
    %6 = vector.load %arg6[%c0_4, %c0_5] : memref<1x256xf32, #tpu.memory_space<vmem>>, vector<1x256xf32>
    %7 = vector.broadcast %6 : vector<1x256xf32> to vector<10x256xf32>
    %8 = arith.addf %5, %7 : vector<10x256xf32>
    %9 = arith.mulf %8, %8 : vector<10x256xf32>
    %10 = arith.mulf %8, %9 : vector<10x256xf32>
    %cst_6 = arith.constant 4.471500e-02 : f32
    %11 = vector.broadcast %cst_6 : f32 to vector<10x256xf32>
    %12 = arith.mulf %11, %10 : vector<10x256xf32>
    %13 = arith.addf %8, %12 : vector<10x256xf32>
    %cst_7 = arith.constant 0.797884583 : f32
    %14 = vector.broadcast %cst_7 : f32 to vector<10x256xf32>
    %15 = arith.mulf %14, %13 : vector<10x256xf32>
    %16 = math.tanh %15 : vector<10x256xf32>
    %cst_8 = arith.constant 1.000000e+00 : f32
    %17 = vector.broadcast %cst_8 : f32 to vector<10x256xf32>
    %18 = arith.addf %17, %16 : vector<10x256xf32>
    %cst_9 = arith.constant 5.000000e-01 : f32
    %19 = vector.broadcast %cst_9 : f32 to vector<10x256xf32>
    %20 = arith.mulf %19, %18 : vector<10x256xf32>
    %21 = arith.mulf %8, %20 : vector<10x256xf32>
    %c0_10 = arith.constant 0 : index
    %c0_11 = arith.constant 0 : index
    %22 = vector.load %arg11[%c0_10, %c0_11] : memref<10x64xf32, #tpu.memory_space<vmem>>, vector<10x64xf32>
    %23 = arith.truncf %21 : vector<10x256xf32> to vector<10x256xbf16>
    %c0_12 = arith.constant 0 : index
    %c0_13 = arith.constant 0 : index
    %24 = vector.load %arg7[%c0_12, %c0_13] : memref<256x64xbf16, #tpu.memory_space<vmem>>, vector<256x64xbf16>
    %cst_14 = arith.constant dense<0.000000e+00> : vector<10x64xf32>
    %25 = tpu.matmul %23, %24, %cst_14 {dimension_numbers = #tpu.dot_dimension_numbers<[1], [0], [0], [1], [0, 0, 1, 1], [], []>} : vector<10x256xbf16>, vector<256x64xbf16>, vector<10x64xf32> -> vector<10x64xf32>
    %26 = arith.addf %22, %25 : vector<10x64xf32>
    %c0_15 = arith.constant 0 : index
    %c0_16 = arith.constant 0 : index
    %27 = vector.load %arg11[%c0_15, %c0_16] : memref<10x64xf32, #tpu.memory_space<vmem>>, vector<10x64xf32>
    tpu.vector_store %arg11[%c0_15, %c0_16], %26 {strides = array<i32>} : memref<10x64xf32, #tpu.memory_space<vmem>>, vector<10x64xf32>,
    %c0_i32_17 = arith.constant 0 : i32
    %28 = arith.cmpi eq, %arg1, %c0_i32_17 : i32
    %29 = arith.extui %28 : i1 to i32
    %c0_i32_18 = arith.constant 0 : i32
    %30 = arith.cmpi ne, %29, %c0_i32_18 : i32
    scf.if %30 {
      %c0_19 = arith.constant 0 : index
      %c0_20 = arith.constant 0 : index
      %31 = vector.load %arg11[%c0_19, %c0_20] : memref<10x64xf32, #tpu.memory_space<vmem>>, vector<10x64xf32>
      %c0_21 = arith.constant 0 : index
      %c0_22 = arith.constant 0 : index
      %32 = vector.load %arg8[%c0_21, %c0_22] : memref<1x64xf32, #tpu.memory_space<vmem>>, vector<1x64xf32>
      %33 = vector.broadcast %32 : vector<1x64xf32> to vector<10x64xf32>
      %34 = arith.addf %31, %33 : vector<10x64xf32>
      %c0_23 = arith.constant 0 : index
      %c0_24 = arith.constant 0 : index
      %35 = vector.load %arg2[%c0_23, %c0_24] : memref<10x64xf32, #tpu.memory_space<vmem>>, vector<10x64xf32>
      %c0_25 = arith.constant 0 : index
      %c0_26 = arith.constant 0 : index
      %36 = vector.load %arg9[%c0_25, %c0_26] : memref<1x64xf32, #tpu.memory_space<vmem>>, vector<1x64xf32>
      %37 = vector.broadcast %36 : vector<1x64xf32> to vector<10x64xf32>
      %38 = arith.mulf %37, %34 : vector<10x64xf32>
      %39 = arith.addf %35, %38 : vector<10x64xf32>
      %c0_27 = arith.constant 0 : index
      %c0_28 = arith.constant 0 : index
      %40 = vector.load %arg10[%c0_27, %c0_28] : memref<10x64xf32, #tpu.memory_space<vmem>>, vector<10x64xf32>
      tpu.vector_store %arg10[%c0_27, %c0_28], %39 {strides = array<i32>} : memref<10x64xf32, #tpu.memory_space<vmem>>, vector<10x64xf32>,
    } else {
    }
    return
  }
  func.func @transform_0(%arg0: i32, %arg1: i32) -> (i32, i32) {
    %c0_i32 = arith.constant 0 : i32
    %c0_i32_0 = arith.constant 0 : i32
    return %arg0, %c0_i32 : i32, i32
  }
  func.func @transform_1(%arg0: i32, %arg1: i32) -> (i32, i32) {
    %c0_i32 = arith.constant 0 : i32
    %c0_i32_0 = arith.constant 0 : i32
    %c0_i32_1 = arith.constant 0 : i32
    return %c0_i32, %c0_i32_0 : i32, i32
  }
  func.func @transform_2(%arg0: i32, %arg1: i32) -> (i32, i32) {
    %c0_i32 = arith.constant 0 : i32
    %c0_i32_0 = arith.constant 0 : i32
    %c0_i32_1 = arith.constant 0 : i32
    return %c0_i32, %c0_i32_0 : i32, i32
  }
  func.func @transform_3(%arg0: i32, %arg1: i32) -> (i32, i32) {
    %c0_i32 = arith.constant 0 : i32
    %c0_i32_0 = arith.constant 0 : i32
    return %c0_i32, %arg1 : i32, i32
  }
  func.func @transform_4(%arg0: i32, %arg1: i32) -> (i32, i32) {
    %c0_i32 = arith.constant 0 : i32
    %c0_i32_0 = arith.constant 0 : i32
    return %c0_i32, %arg1 : i32, i32
  }
  func.func @transform_5(%arg0: i32, %arg1: i32) -> (i32, i32) {
    %c0_i32 = arith.constant 0 : i32
    %c0_i32_0 = arith.constant 0 : i32
    return %arg1, %c0_i32 : i32, i32
  }
  func.func @transform_6(%arg0: i32, %arg1: i32) -> (i32, i32) {
    %c0_i32 = arith.constant 0 : i32
    %c0_i32_0 = arith.constant 0 : i32
    %c0_i32_1 = arith.constant 0 : i32
    return %c0_i32, %c0_i32_0 : i32, i32
  }
  func.func @transform_7(%arg0: i32, %arg1: i32) -> (i32, i32) {
    %c0_i32 = arith.constant 0 : i32
    %c0_i32_0 = arith.constant 0 : i32
    %c0_i32_1 = arith.constant 0 : i32
    return %c0_i32, %c0_i32_0 : i32, i32
  }
  func.func @transform_8(%arg0: i32, %arg1: i32) -> (i32, i32) {
    %c0_i32 = arith.constant 0 : i32
    %c0_i32_0 = arith.constant 0 : i32
    return %arg0, %c0_i32 : i32, i32
  }
}

module attributes {stable_mosaic.version = 11 : i64} {
  func.func @_linear_kernel(%arg0: i32, %arg1: i32, %arg2: memref<2x64xf32, #tpu.memory_space<vmem>>, %arg3: memref<64x1xbf16, #tpu.memory_space<vmem>>, %arg4: memref<1x1xf32, #tpu.memory_space<vmem>>, %arg5: memref<2x1xf32, #tpu.memory_space<vmem>>) attributes {dimension_semantics = [#tpu.dimension_semantics<parallel>, #tpu.dimension_semantics<parallel>], iteration_bounds = array<i64: 1, 1>, scalar_prefetch = 0 : i64, scratch_operands = 0 : i64, tpu.core_type = #tpu.core_type<tc>, window_params = [{transform_indices = @transform_0, window_bounds = array<i64: 2, 64>}, {transform_indices = @transform_1, window_bounds = array<i64: 64, 1>}, {transform_indices = @transform_2, window_bounds = array<i64: 1, 1>}, {transform_indices = @transform_3, window_bounds = array<i64: 2, 1>}]} {
    %c0 = arith.constant 0 : index
    %c0_0 = arith.constant 0 : index
    %0 = vector.load %arg2[%c0, %c0_0] : memref<2x64xf32, #tpu.memory_space<vmem>>, vector<2x64xf32>
    %1 = arith.truncf %0 : vector<2x64xf32> to vector<2x64xbf16>
    %c0_1 = arith.constant 0 : index
    %c0_2 = arith.constant 0 : index
    %2 = vector.load %arg3[%c0_1, %c0_2] : memref<64x1xbf16, #tpu.memory_space<vmem>>, vector<64x1xbf16>
    %cst = arith.constant dense<0.000000e+00> : vector<2x1xf32>
    %3 = tpu.matmul %1, %2, %cst {dimension_numbers = #tpu.dot_dimension_numbers<[1], [0], [0], [1], [0, 0, 1, 1], [], []>} : vector<2x64xbf16>, vector<64x1xbf16>, vector<2x1xf32> -> vector<2x1xf32>
    %c0_3 = arith.constant 0 : index
    %c0_4 = arith.constant 0 : index
    %4 = vector.load %arg4[%c0_3, %c0_4] : memref<1x1xf32, #tpu.memory_space<vmem>>, vector<1x1xf32>
    %5 = vector.broadcast %4 : vector<1x1xf32> to vector<2x1xf32>
    %6 = arith.addf %3, %5 : vector<2x1xf32>
    %c0_5 = arith.constant 0 : index
    %c0_6 = arith.constant 0 : index
    %7 = vector.load %arg5[%c0_5, %c0_6] : memref<2x1xf32, #tpu.memory_space<vmem>>, vector<2x1xf32>
    tpu.vector_store %arg5[%c0_5, %c0_6], %6 {strides = array<i32>} : memref<2x1xf32, #tpu.memory_space<vmem>>, vector<2x1xf32>,
    return
  }
  func.func @transform_0(%arg0: i32, %arg1: i32) -> (i32, i32) {
    %c0_i32 = arith.constant 0 : i32
    %c0_i32_0 = arith.constant 0 : i32
    return %arg0, %c0_i32 : i32, i32
  }
  func.func @transform_1(%arg0: i32, %arg1: i32) -> (i32, i32) {
    %c0_i32 = arith.constant 0 : i32
    %c0_i32_0 = arith.constant 0 : i32
    return %c0_i32, %arg1 : i32, i32
  }
  func.func @transform_2(%arg0: i32, %arg1: i32) -> (i32, i32) {
    %c0_i32 = arith.constant 0 : i32
    %c0_i32_0 = arith.constant 0 : i32
    return %c0_i32, %arg1 : i32, i32
  }
  func.func @transform_3(%arg0: i32, %arg1: i32) -> (i32, i32) {
    %c0_i32 = arith.constant 0 : i32
    return %arg0, %arg1 : i32, i32
  }
}

module attributes {stable_mosaic.version = 11 : i64} {
  func.func @_layernorm_kernel(%arg0: i32, %arg1: memref<10x64xf32, #tpu.memory_space<vmem>>, %arg2: memref<1x64xf32, #tpu.memory_space<vmem>>, %arg3: memref<1x64xf32, #tpu.memory_space<vmem>>, %arg4: memref<10x64xf32, #tpu.memory_space<vmem>>) attributes {dimension_semantics = [#tpu.dimension_semantics<parallel>], iteration_bounds = array<i64: 1>, scalar_prefetch = 0 : i64, scratch_operands = 0 : i64, tpu.core_type = #tpu.core_type<tc>, window_params = [{transform_indices = @transform_0, window_bounds = array<i64: 10, 64>}, {pipeline_mode = #tpu.pipeline_mode<synchronous>, transform_indices = @transform_1, window_bounds = array<i64: 1, 64>}, {pipeline_mode = #tpu.pipeline_mode<synchronous>, transform_indices = @transform_2, window_bounds = array<i64: 1, 64>}, {transform_indices = @transform_3, window_bounds = array<i64: 10, 64>}]} {
    %c0 = arith.constant 0 : index
    %c0_0 = arith.constant 0 : index
    %0 = vector.load %arg1[%c0, %c0_0] : memref<10x64xf32, #tpu.memory_space<vmem>>, vector<10x64xf32>
    %cst = arith.constant dense<0.000000e+00> : vector<10xf32>
    %1 = vector.multi_reduction <add>, %0, %cst [1] : vector<10x64xf32> to vector<10xf32>
    %2 = vector.shape_cast %1 : vector<10xf32> to vector<10x1xf32>
    %cst_1 = arith.constant 6.400000e+01 : f32
    %3 = vector.broadcast %cst_1 : f32 to vector<10x1xf32>
    %4 = arith.divf %2, %3 : vector<10x1xf32>
    %5 = vector.broadcast %4 : vector<10x1xf32> to vector<10x64xf32>
    %6 = arith.subf %0, %5 : vector<10x64xf32>
    %7 = arith.mulf %6, %6 : vector<10x64xf32>
    %cst_2 = arith.constant dense<0.000000e+00> : vector<10xf32>
    %8 = vector.multi_reduction <add>, %7, %cst_2 [1] : vector<10x64xf32> to vector<10xf32>
    %9 = vector.shape_cast %8 : vector<10xf32> to vector<10x1xf32>
    %cst_3 = arith.constant 6.400000e+01 : f32
    %10 = vector.broadcast %cst_3 : f32 to vector<10x1xf32>
    %11 = arith.divf %9, %10 : vector<10x1xf32>
    %12 = vector.broadcast %4 : vector<10x1xf32> to vector<10x64xf32>
    %13 = arith.subf %0, %12 : vector<10x64xf32>
    %cst_4 = arith.constant 9.99999997E-7 : f32
    %14 = vector.broadcast %cst_4 : f32 to vector<10x1xf32>
    %15 = arith.addf %11, %14 : vector<10x1xf32>
    %16 = math.rsqrt %15 : vector<10x1xf32>
    %17 = vector.broadcast %16 : vector<10x1xf32> to vector<10x64xf32>
    %18 = arith.mulf %13, %17 : vector<10x64xf32>
    %c0_5 = arith.constant 0 : index
    %c0_6 = arith.constant 0 : index
    %19 = vector.load %arg2[%c0_5, %c0_6] : memref<1x64xf32, #tpu.memory_space<vmem>>, vector<1x64xf32>
    %20 = vector.broadcast %19 : vector<1x64xf32> to vector<10x64xf32>
    %21 = arith.mulf %18, %20 : vector<10x64xf32>
    %c0_7 = arith.constant 0 : index
    %c0_8 = arith.constant 0 : index
    %22 = vector.load %arg3[%c0_7, %c0_8] : memref<1x64xf32, #tpu.memory_space<vmem>>, vector<1x64xf32>
    %23 = vector.broadcast %22 : vector<1x64xf32> to vector<10x64xf32>
    %24 = arith.addf %21, %23 : vector<10x64xf32>
    %c0_9 = arith.constant 0 : index
    %c0_10 = arith.constant 0 : index
    %25 = vector.load %arg4[%c0_9, %c0_10] : memref<10x64xf32, #tpu.memory_space<vmem>>, vector<10x64xf32>
    tpu.vector_store %arg4[%c0_9, %c0_10], %24 {strides = array<i32>} : memref<10x64xf32, #tpu.memory_space<vmem>>, vector<10x64xf32>,
    return
  }
  func.func @transform_0(%arg0: i32) -> (i32, i32) {
    %c0_i32 = arith.constant 0 : i32
    %c0_i32_0 = arith.constant 0 : i32
    return %arg0, %c0_i32 : i32, i32
  }
  func.func @transform_1(%arg0: i32) -> (i32, i32) {
    %c0_i32 = arith.constant 0 : i32
    %c0_i32_0 = arith.constant 0 : i32
    %c0_i32_1 = arith.constant 0 : i32
    return %c0_i32, %c0_i32_0 : i32, i32
  }
  func.func @transform_2(%arg0: i32) -> (i32, i32) {
    %c0_i32 = arith.constant 0 : i32
    %c0_i32_0 = arith.constant 0 : i32
    %c0_i32_1 = arith.constant 0 : i32
    return %c0_i32, %c0_i32_0 : i32, i32
  }
  func.func @transform_3(%arg0: i32) -> (i32, i32) {
    %c0_i32 = arith.constant 0 : i32
    %c0_i32_0 = arith.constant 0 : i32
    return %arg0, %c0_i32 : i32, i32
  }
}

</mosaic_0001>

<bundles_post_ra>
// kernel: _lambda_.9
= control target key start
LH: loop header
LB: loop body
LE: loop exit
PB: predicated region body
PF: predicated region fallthrough
CT: control target
= control target key end

     0   :  { %v634_v35 = vmov 0.0   ;;  %vm635_vm0 = vmmov 0   ;;  %vm472_vm1 = vcmask 523264   ;;  %s797_s1 = inlined_call_operand.vmem [shape: bf16[640,64], index: 1, kind: input, shape index: {}]   ;;  %s798_s0 = inlined_call_operand.vmem [shape: f32[8,640], index: 0, kind: input, shape index: {}]   ;;  %s799_s2 = inlined_call_operand.vmem [shape: f32[1,64], index: 2, kind: input, shape index: {}]   ;;  %s800_s3 = inlined_call_operand.vmem [shape: f32[8,64], index: 3, kind: output, shape index: {}]  }
   0x1   :  { %v594_v0 = vld [vmem:[%s797_s1 + $0x40] sm:$0xff]   ;;  %v598_v4 = vld [vmem:[%s797_s1 + $0x48] sm:$0xff]   ;;  %v602_v8 = vld [vmem:[%s797_s1 + $0x50] sm:$0xff]  }
   0x2   :  { %v595_v1 = vld [vmem:[%s797_s1] sm:$0xff]   ;;  %519 = vmatprep.subr.bf16.mxu0 %v594_v0  ;;  %v599_v5 = vld [vmem:[%s797_s1 + $0x8] sm:$0xff]   ;;  %v603_v9 = vld [vmem:[%s797_s1 + $0x10] sm:$0xff]  }
   0x3   :  { %v596_v2 = vld [vmem:[%s797_s1 + $0xc0] sm:$0xff]   ;;  %520 = vmatpush3.bf16.msra.mxu0 %v595_v1  ;;  %v600_v6 = vld [vmem:[%s797_s1 + $0xc8] sm:$0xff]   ;;  %v604_v10 = vld [vmem:[%s797_s1 + $0xd0] sm:$0xff]  }
   0x4   :  { %v597_v3 = vld [vmem:[%s797_s1 + $0x80] sm:$0xff]   ;;  %541 = vmatprep.subr.bf16.mxu1 %v596_v2  ;;  %521 = vmatprep.subr.bf16.mxu0 %v598_v4  ;;  %v601_v7 = vld [vmem:[%s797_s1 + $0x88] sm:$0xff]   ;;  %v605_v11 = vld [vmem:[%s797_s1 + $0x90] sm:$0xff]  }
   0x5   :  { %542 = vmatpush3.bf16.msra.mxu1 %v597_v3  ;;  %v606_v12 = vld [vmem:[%s797_s1 + $0x58] sm:$0xff]   ;;  %v610_v16 = vld [vmem:[%s797_s1 + $0x60] sm:$0xff]   ;;  %v614_v20 = vld [vmem:[%s797_s1 + $0x68] sm:$0xff]  }
   0x6   :  { %543 = vmatprep.subr.bf16.mxu1 %v600_v6  ;;  %v607_v13 = vld [vmem:[%s797_s1 + $0x18] sm:$0xff]   ;;  %v611_v17 = vld [vmem:[%s797_s1 + $0x20] sm:$0xff]   ;;  %v615_v21 = vld [vmem:[%s797_s1 + $0x28] sm:$0xff]  }
   0x7   :  { %522 = vmatpush3.bf16.msra.mxu0 %v599_v5  ;;  %v608_v14 = vld [vmem:[%s797_s1 + $0xd8] sm:$0xff]   ;;  %v612_v18 = vld [vmem:[%s797_s1 + $0xe0] sm:$0xff]   ;;  %v616_v22 = vld [vmem:[%s797_s1 + $0xe8] sm:$0xff]  }
   0x8   :  { %523 = vmatprep.subr.bf16.mxu0 %v602_v8  ;;  %v609_v15 = vld [vmem:[%s797_s1 + $0x98] sm:$0xff]   ;;  %v613_v19 = vld [vmem:[%s797_s1 + $0xa0] sm:$0xff]   ;;  %v617_v23 = vld [vmem:[%s797_s1 + $0xa8] sm:$0xff]  }
   0x9   :  { %544 = vmatpush3.bf16.msra.mxu1 %v601_v7  ;;  %v618_v24 = vld [vmem:[%s797_s1 + $0x70] sm:$0xff]   ;;  %v622_v28 = vld [vmem:[%s797_s1 + $0x78] sm:$0xff]   ;;  %v16_v31 = vld [vmem:[%s798_s0 + $0x8] sm:$0xff] }
   0xa   :  { %545 = vmatprep.subr.bf16.mxu1 %v604_v10  ;;  %v619_v25 = vld [vmem:[%s797_s1 + $0x30] sm:$0xff]   ;;  %v623_v29 = vld [vmem:[%s797_s1 + $0x38] sm:$0xff]   ;;  %v21_v32 = vpack.c.bf16 %v16_v31, %v16_v31  ;;  %v15_v34 = vld [vmem:[%s798_s0] sm:$0xff] }
   0xb   :  { %524 = vmatpush3.bf16.msra.mxu0 %v603_v9  ;;  %v620_v26 = vld [vmem:[%s797_s1 + $0xf0] sm:$0xff]   ;;  %v624_v30 = vld [vmem:[%s797_s1 + $0xf8] sm:$0xff]   ;;  %v20_v37 = vpack.c.bf16 %v15_v34, %v15_v34  ;;  %v626_v39 = vld [vmem:[%s797_s1 + $0x100] sm:$0xff]  }
   0xc   :  { %525 = vmatprep.subr.bf16.mxu0 %v606_v12  ;;  %v621_v27 = vld [vmem:[%s797_s1 + $0xb0] sm:$0xff]   ;;  %v625_v33 = vld [vmem:[%s797_s1 + $0xb8] sm:$0xff]   ;;  %384 = vmatprep.mubr.bf16.mxu0 %v21_v32  ;;  %v627_v42 = vld [vmem:[%s797_s1 + $0x108] sm:$0xff]  }
   0xd   :  { %546 = vmatpush3.bf16.msra.mxu1 %v605_v11  ;;  %v18_v36 = vld [vmem:[%s798_s0 + $0x18] sm:$0xff]  ;;  %v17_v40 = vld [vmem:[%s798_s0 + $0x10] sm:$0xff]  ;;  %v630_v45 = vld [vmem:[%s797_s1 + $0x120] sm:$0xff]  }
   0xe   :  { %547 = vmatprep.subr.bf16.mxu1 %v608_v14  ;;  %v23_v38 = vpack.c.bf16 %v18_v36, %v18_v36  ;;  %v22_v41 = vpack.c.bf16 %v17_v40, %v17_v40  ;;  %v628_v43 = vld [vmem:[%s797_s1 + $0x110] sm:$0xff]   ;;  %v629_v44 = vld [vmem:[%s797_s1 + $0x118] sm:$0xff]   ;;  %v631_v46 = vld [vmem:[%s797_s1 + $0x128] sm:$0xff]  }
   0xf   :  { %526 = vmatpush3.bf16.msra.mxu0 %v607_v13  ;;  %v632_v47 = vld [vmem:[%s797_s1 + $0x130] sm:$0xff]   ;;  %v633_v48 = vld [vmem:[%s797_s1 + $0x138] sm:$0xff]   ;;  %v19_v49 = vld [vmem:[%s798_s0 + $0x20] sm:$0xff] }
  0x10   :  { %527 = vmatprep.subr.bf16.mxu0 %v610_v16  ;;  %424 = vmatprep.mubr.bf16.mxu1 %v23_v38  ;;  %v24_v50 = vpack.c.bf16 %v19_v49, %v19_v49  ;;  %v478_v52 = vld [vmem:[%s799_s2] ss:$0 sm:$0xff] }
  0x11   :  { %548 = vmatpush3.bf16.msra.mxu1 %v609_v15 }
  0x12   :  { %549 = vmatprep.subr.bf16.mxu1 %v612_v18 }
  0x13   :  { %528 = vmatpush3.bf16.msra.mxu0 %v611_v17 }
  0x14   :  { %529 = vmatprep.subr.bf16.mxu0 %v614_v20 }
  0x15   :  { %550 = vmatpush3.bf16.msra.mxu1 %v613_v19 }
  0x16   :  { %551 = vmatprep.subr.bf16.mxu1 %v616_v22 }
  0x17   :  { %530 = vmatpush3.bf16.msra.mxu0 %v615_v21 }
  0x18   :  { %531 = vmatprep.subr.bf16.mxu0 %v618_v24 }
  0x19   :  { %552 = vmatpush3.bf16.msra.mxu1 %v617_v23 }
  0x1a   :  { %553 = vmatprep.subr.bf16.mxu1 %v620_v26 }
  0x1b   :  { %532 = vmatpush3.bf16.msra.mxu0 %v619_v25 }
  0x1c   :  { %533 = vmatprep.subr.bf16.mxu0 %v622_v28 }
  0x1d   :  { %554 = vmatpush3.bf16.msra.mxu1 %v621_v27 }
  0x1e   :  { %555 = vmatprep.subr.bf16.mxu1 %v624_v30 }
  0x1f   :  { %534 = vmatpush3.bf16.msra.mxu0 %v623_v29 }
  0x20   :  { %572 = vmatprep.subr.bf16.mxu0 %v634_v35 }
  0x21   :  { %556 = vmatpush3.bf16.msra.mxu1 %v625_v33 }
  0x22   :  { %385 = vmatmul.mubr.bf16.vlgmr.msra.gmra.mrb[0].mxu0 %v20_v37 }
  0x23   :  { %573 = vmatpush3.bf16.msra.mxu0 %v626_v39  ;;  %588 = vmatprep.mubr.msk.bf16.mxu0 %vm635_vm0, %v634_v35 }
  0x24   :  { %425 = vmatmul.mubr.bf16.vlgmr.msra.gmra.mrb[0].mxu1 %v22_v41  ;;  %574 = vmatprep.subr.bf16.mxu0 %v634_v35 }
  0x27   :  { %575 = vmatpush3.bf16.msra.mxu0 %v627_v42 }
  0x28   :  { %576 = vmatprep.subr.bf16.mxu0 %v634_v35 }
  0x2b   :  { %577 = vmatpush3.bf16.msra.mxu0 %v628_v43 }
  0x2c   :  { %578 = vmatprep.subr.bf16.mxu0 %v634_v35 }
  0x2f   :  { %579 = vmatpush3.bf16.msra.mxu0 %v629_v44 }
  0x30   :  { %580 = vmatprep.subr.bf16.mxu0 %v634_v35 }
  0x33   :  { %581 = vmatpush3.bf16.msra.mxu0 %v630_v45 }
  0x34   :  { %582 = vmatprep.subr.bf16.mxu0 %v634_v35 }
  0x37   :  { %583 = vmatpush3.bf16.msra.mxu0 %v631_v46 }
  0x38   :  { %584 = vmatprep.subr.bf16.mxu0 %v634_v35 }
  0x3b   :  { %585 = vmatpush3.bf16.msra.mxu0 %v632_v47 }
  0x3c   :  { %586 = vmatprep.subr.bf16.mxu0 %v634_v35 }
  0x3f   :  { %587 = vmatpush3.bf16.msra.mxu0 %v633_v48 }
  0x42   :  { %589 = vmatmul.mubr.bf16.vlgmr.msra.gmra.mrb[4].mxu0 %v24_v50 }
  0xf5   :  { %v535_v51 = vpop.f32.mrb[0].mxu0 }
  0xf6   :  { %v536_v53 = vpop.f32.mrb[1].mxu0 }
  0xf7   :  { %v537_v54 = vadd.f32 %v536_v53, %v535_v51  ;;  %v538_v55 = vpop.f32.mrb[2].mxu0  ;;  %v557_v56 = vpop.f32.mrb[0].mxu1 }
  0xf8   :  { %v539_v57 = vpop.f32.mrb[3].mxu0  ;;  %v558_v58 = vpop.f32.mrb[1].mxu1 }
  0xf9   :  { %v387_v59 = vadd.f32 %v537_v54, %v478_v52  ;;  %v559_v60 = vadd.f32 %v558_v58, %v557_v56  ;;  %v560_v61 = vpop.f32.mrb[2].mxu1 }
  0xfa   :  { %v561_v62 = vpop.f32.mrb[3].mxu1 }
  0xfb   :  { %v427_v63 = vadd.f32 %v559_v60, %v387_v59 }
 0x115   :  { %v466_v0 = vpop.f32.mrb[4].mxu0 }
 0x116   :  { %v467_v1 = vadd.f32 %v466_v0, %v427_v63  ;;  %v590_v2 = vpop.f32.mrb[5].mxu0 }
 0x117   :  { %v469_v3 = vpop.f32.mrb[6].mxu0 }
 0x118   :  { %473 = vst.msk [vmem:[%s800_s3] sm:$0xff] %vm472_vm1, %v467_v1  ;;  %v591_v4 = vpop.f32.mrb[7].mxu0 }

// kernel: _lambda_.10
= control target key start
LH: loop header
LB: loop body
LE: loop exit
PB: predicated region body
PF: predicated region fallthrough
CT: control target
= control target key end

     0   :  { %vm27_vm0 = vcmask 523264   ;;  %vm31_vm1 = vcmask 517120   ;;  %v262_v22 = vmov 0   ;;  %vm82_vm2 = vcmask 519168   ;;  %s341_s0 = inlined_call_operand.vmem [shape: f32[10,64], index: 0, kind: input, shape index: {}]   ;;  %s342_s3 = inlined_call_operand.vmem [shape: bf16[64,192], index: 3, kind: input, shape index: {}]   ;;  %s343_s1 = inlined_call_operand.vmem [shape: f32[1,64], index: 1, kind: input, shape index: {}]   ;;  %s344_s2 = inlined_call_operand.vmem [shape: f32[1,64], index: 2, kind: input, shape index: {}]   ;;  %s345_s4 = inlined_call_operand.vmem [shape: f32[1,192], index: 4, kind: input, shape index: {}]   ;;  %s346_s5 = inlined_call_operand.vmem [shape: bf16[10,192], index: 5, kind: output, shape index: {}]  }
   0x1   :  { %v25_v0 = vld [vmem:[%s341_s0] sm:$0xff]  ;;  %v26_v1 = vld [vmem:[%s341_s0 + $0x8] sm:$0x3]  ;;  %v248_v16 = vld [vmem:[%s342_s3 + $0x14] ss:$8 sps:$4 sm:$0xff]   ;;  %189 = vmatprep.mubr.bf16.mxu0 %v262_v22  ;;  %vm84_vm3 = vcmask 516096   ;;  %v98_v42 = vlaneseq }
   0x2   :  { %v28_v2 = vsel %vm27_vm0, %v25_v0, 0.0  ;;  %v32_v3 = vsel %vm31_vm1, %v26_v1, 0.0  ;;  %v245_v14 = vld [vmem:[%s342_s3 + $0x4] ss:$8 sps:$4 sm:$0xff]   ;;  %v247_v15 = vld [vmem:[%s342_s3] ss:$8 sps:$4 sm:$0xff]  }
   0x3   :  { %29 = vadd.xlane.f32.xlu0 %v28_v2  ;;  %157 = vmatprep.subr.bf16.mxu0 %v245_v14  ;;  %v250_v17 = vld [vmem:[%s342_s3 + $0x10] ss:$8 sps:$4 sm:$0xff]   ;;  %v251_v18 = vld [vmem:[%s342_s3 + $0x24] ss:$8 sps:$4 sm:$0xff]   ;;  %v253_v19 = vld [vmem:[%s342_s3 + $0x20] ss:$8 sps:$4 sm:$0xff]  }
   0x4   :  { %158 = vmatpush1.bf16.msra.mxu0 %v247_v15  ;;  %v254_v20 = vld [vmem:[%s342_s3 + $0x34] ss:$8 sps:$4 sm:$0xff]   ;;  %v256_v21 = vld [vmem:[%s342_s3 + $0x30] ss:$8 sps:$4 sm:$0xff]   ;;  %v224_v30 = vld [vmem:[%s343_s1] ss:$0 sm:$0xff] }
   0x5   :  { %159 = vmatprep.subr.bf16.mxu0 %v248_v16  ;;  %v225_v32 = vld [vmem:[%s344_s2] ss:$0 sm:$0xff]  ;;  %v99_v43 = vshrl.u32 %v98_v42, 7  ;;  %vm212_vm4 = vcmask 1043456   ;;  %vm213_vm5 = vcmask 523268   ;;  %vm216_vm6 = vcmask 1040384  }
   0x6   :  { %v96_v45 = vld [vmem:[%s345_s4] sm:$0x3]  ;;  %vm217_vm7 = vcmask 520196   ;;  %vm214_vm8 = vmor %vm213_vm5, %vm212_vm4 }
   0x7   :  { %33 = vadd.xlane.f32.xlu0 %v32_v3  ;;  %v100_v44 = vsub.s32 0, %v99_v43  ;;  %v104_v46 = vsub.s32 1, %v99_v43  ;;  %vm218_vm9 = vmor %vm217_vm7, %vm216_vm6 }
   0x8   :  { %160 = vmatpush1.bf16.msra.mxu0 %v250_v17 }
   0x9   :  { %161 = vmatprep.subr.bf16.mxu0 %v251_v18  ;;  %v101_v47 = vrot.slane %v96_v45, %v100_v44  ;;  %v105_v48 = vrot.slane %v96_v45, %v104_v46 }
   0xc   :  { %162 = vmatpush1.bf16.msra.mxu0 %v253_v19 }
   0xd   :  { %163 = vmatprep.subr.bf16.mxu0 %v254_v20 }
  0x10   :  { %164 = vmatpush1.bf16.msra.mxu0 %v256_v21 }
  0x90   :  { %v30_v4 = vpop.xlane.xlu0 %29 }
  0x91   :  { %v36_v5 = vmul.f32 0.015625, %v30_v4 }
  0x93   :  { %v38_v6 = vsub.f32 %v25_v0, %v36_v5 }
  0x94   :  { %v34_v7 = vpop.xlane.xlu0 %33 }
  0x95   :  { %v37_v8 = vmul.f32 0.015625, %v34_v7  ;;  %v40_v9 = vmul.f32 %v38_v6, %v38_v6 }
  0x97   :  { %v39_v10 = vsub.f32 %v26_v1, %v37_v8  ;;  %v42_v11 = vsel %vm27_vm0, %v40_v9, 0.0 }
  0x98   :  { %43 = vadd.xlane.f32.xlu1 %v42_v11 }
  0x99   :  { %v41_v12 = vmul.f32 %v39_v10, %v39_v10 }
  0x9b   :  { %v45_v13 = vsel %vm31_vm1, %v41_v12, 0.0 }
  0x9c   :  { %46 = vadd.xlane.f32.xlu1 %v45_v13 }
 0x125   :  { %v44_v23 = vpop.xlane.xlu1 %43 }
 0x126   :  { %v48_v24 = vmul.f32 0.015625, %v44_v23 }
 0x128   :  { %v50_v25 = vadd.f32 1e-06, %v48_v24 }
 0x129   :  { %v47_v26 = vpop.xlane.xlu1 %46 }
 0x12a   :  { %258 = vrsqrt.f32 %v50_v25  ;;  %v49_v27 = vmul.f32 0.015625, %v47_v26 }
 0x12c   :  { %v51_v28 = vadd.f32 1e-06, %v49_v27 }
 0x12e   :  { %260 = vrsqrt.f32 %v51_v28 }
 0x134   :  { %v259_v29 = vpop.eup %258 }
 0x135   :  { %v54_v31 = vmul.f32 %v259_v29, %v38_v6 }
 0x137   :  { %v63_v33 = vmul.f32 %v224_v30, %v54_v31 }
 0x138   :  { %v261_v34 = vpop.eup %260 }
 0x139   :  { %v72_v35 = vadd.f32 %v225_v32, %v63_v33  ;;  %v55_v36 = vmul.f32 %v261_v34, %v39_v10 }
 0x13b   :  { %v240_v37 = vpack.c.bf16 %v72_v35, %v72_v35  ;;  %v64_v38 = vmul.f32 %v224_v30, %v55_v36 }
 0x13d   :  { %83 = vst.msk [vmem:[#allocation2] sm:$0xf] %vm82_vm2, %v240_v37  ;;  %v73_v39 = vadd.f32 %v225_v32, %v64_v38 }
 0x13f   :  { %v241_v40 = vpack.c.bf16 %v73_v39, %v73_v39 }
 0x141   :  { %85 = vst.msk [vmem:[#allocation2 + $0x4] sm:$0x1] %vm84_vm3, %v241_v40 }
 0x148   :  { %v257_v41 = vld [vmem:[#allocation2] sm:$0x1f]  }
 0x149   :  { %237 = vmatmul.mubr.msk.bf16.vlgmr.msra.gmra.mrb[0].mxu0 %vm27_vm0, %v257_v41 }
 0x21c   :  { %v191_v49 = vpop.f32.mrb[0].mxu0 }
 0x21d   :  { %v192_v50 = vadd.f32 %v191_v49, %v101_v47  ;;  %v193_v51 = vpop.f32.mrb[1].mxu0 }
 0x21e   :  { %v194_v52 = vadd.f32 %v193_v51, %v105_v48  ;;  %v195_v53 = vpop.f32.mrb[2].mxu0 }
 0x21f   :  { %v196_v54 = vadd.f32 %v195_v53, %v101_v47  ;;  %v197_v55 = vpop.f32.mrb[3].mxu0 }
 0x220   :  { %v242_v56 = vpack.c.bf16 %v194_v52, %v192_v50  ;;  %v198_v57 = vadd.f32 %v197_v55, %v105_v48 }
 0x222   :  { %215 = vst.msk [vmem:[%s346_s5] sm:$0xff] %vm214_vm8, %v242_v56  ;;  %v243_v58 = vpack.c.bf16 %v198_v57, %v196_v54 }
 0x224   :  { %219 = vst.msk [vmem:[%s346_s5 + $0x8] sm:$0x11] %vm218_vm9, %v243_v58 }

// kernel: _lambda_.11
= control target key start
LH: loop header
LB: loop body
LE: loop exit
PB: predicated region body
PF: predicated region fallthrough
CT: control target
= control target key end

     0   :  { %s1096_s24 = smov 0   ;;  %s1098_s25 = smov 0   ;;  %s1204_s0 = inlined_call_operand.vmem [shape: f32[2,5,64], index: 0, kind: input, shape index: {}]   ;;  %s1205_s1 = inlined_call_operand.vmem [shape: bf16[2,3,2,5,32], index: 1, kind: input, shape index: {}, may-alias: {1,2,3}]   ;;  %s1206_s2 = inlined_call_operand.vmem [shape: bf16[2,3,2,5,32], index: 2, kind: input, shape index: {}, may-alias: {1,2,3}]   ;;  %s1207_s3 = inlined_call_operand.vmem [shape: bf16[2,3,2,5,32], index: 3, kind: input, shape index: {}, may-alias: {1,2,3}]   ;;  %s1208_s4 = inlined_call_operand.vmem [shape: bf16[64,64], index: 4, kind: input, shape index: {}]   ;;  %s1209_s5 = inlined_call_operand.vmem [shape: f32[1,64], index: 5, kind: input, shape index: {}]   ;;  %s1210_s6 = inlined_call_operand.vmem [shape: f32[1,64], index: 6, kind: input, shape index: {}]   ;;  %s1211_s7 = inlined_call_operand.vmem [shape: f32[2,5,64], index: 7, kind: output, shape index: {}]  }
   0x1   :  { %s1100_s26 = smov 0   ;;  %s1102_s27 = smov 0  }
   0x2   :  { %s1104_s28 = smov 0  }
   0x3 LB: > { %s35_s29 = sadd.s32 1, %s1038_s26  ;;  %s43_s30 = sadd.s32 1, %s1042_s27  ;;  %s1046_s28 = sphi %s1104_s28, %s17_s28   ;;  %s1042_s27 = sphi %s1102_s27, %s1215_s27   ;;  %s1038_s26 = sphi %s1100_s26, %s1214_s26   ;;  %s1034_s25 = sphi %s1098_s25, %s1213_s25   ;;  %s1030_s24 = sphi %s1096_s24, %s1212_s24  }
   0x4   : > { %p37_p0 = scmp.ge.s32.totalorder %s35_s29, 2  ;;  %p890_p1 = scmp.ge.s32.totalorder %s1046_s28, 1 }
   0x5   : > { %p331_p2 = scmp.lt.s32.totalorder %s1046_s28, 5 }
   0x6   : > { %s1217_s29 = smov (%p37_p0, %s35_s29), 0  ;;  %s1219_s30 = smov (!%p37_p0, %s43_s30), %s1042_s27 }
   0x7   : > { %p332_p3 = pnand %p890_p1, %p331_p2  ;;  %p45_p4 = scmp.ge.s32.totalorder %s1219_s30, 2 }
   0x8   : > { %vm460_vm0 = vcmask (!%p332_p3), 258048   ;;  %p402_p5 = scmp.lt.s32.totalorder (!%p332_p3), %s1034_s25, 1  ;;  %p411_p6 = scmp.lt.s32.totalorder (!%p332_p3), %s1030_s24, 1  ;;  %v1048_v0 = vmov (!%p332_p3), 0.0   ;;  %vm1049_vm1 = vmmov (!%p332_p3), 0   ;;  %vm466_vm2 = vcmask (!%p332_p3), 261120  }
   0x9   : > { %s1221_s30 = smov (%p45_p4, %s1219_s30), 0  ;;  %335 = sbr.rel (%p332_p3) target bundleno = 1172 (0x494), region = 48 }
   0xa   : > { %461 = vst.msk [vmem:[#allocation4] sm:$0x1f] (!%p332_p3), %vm460_vm0, %v1048_v0  ;;  %922 = vmatprep.subr.bf16.mxu0 (!%p332_p3), %v1048_v0  ;;  %924 = vmatprep.mubr.msk.bf16.mxu0 (!%p332_p3), %vm1049_vm1, %v1048_v0  ;;  %vm457_vm3 = vcmask (!%p332_p3), 4096   ;;  %v1050_v5 = vmov (!%p332_p3), -inf   ;;  %vm514_vm4 = vcmask (!%p332_p3), 36864   ;;  %v1051_v11 = vmov (!%p332_p3), 0  }
   0xb   : > { %928 = vmatprep.subr.bf16.mxu1 (!%p332_p3), %v1048_v0  ;;  %930 = vmatprep.mubr.msk.bf16.mxu1 (!%p332_p3), %vm1049_vm1, %v1048_v0  ;;  %458 = vst.msk [vmem:[#allocation2] sm:$0x1f] (!%p332_p3), %vm457_vm3, %v1050_v5  ;;  %459 = vst.msk [vmem:[#allocation3] sm:$0x1f] (!%p332_p3), %vm457_vm3, %v1048_v0  ;;  %vm550_vm5 = vcmask (!%p332_p3), 1041408   ;;  %vm551_vm6 = vcmask (!%p332_p3), 1042432  }
   0xc   : > { %995 = vset.pattern.permute.xlu0 (!%p332_p3), %v1051_v11  ;;  %996 = vset.pattern.permute.xlu1 (!%p332_p3), %v1051_v11  ;;  %v1052_v17 = vmov (!%p332_p3), 65535   ;;  %vm546_vm7 = vcmask (!%p332_p3), 39936   ;;  %p622_p7 = scmp.eq.s32.totalorder (!%p332_p3), %s1030_s24, 1  ;;  %s900_s11 = sshll.u32 (!%p332_p3), %s1030_s24, 2  ;;  %vm616_vm8 = vcmask (!%p332_p3), 256000  }
   0xd   : > { %v552_v18 = vsel (!%p332_p3), %vm550_vm5, 4294967295, %v1052_v17  ;;  %vm617_vm9 = vsmask.f32 (!%p332_p3), 2304  ;;  %s615_s12 = scalar_lea.vmem (!%p332_p3), [#allocation5], %s900_s11 }
   0xe   : > { %v553_v19 = vsel (!%p332_p3), %vm551_vm6, %v552_v18, 0  ;;  %vm618_vm10 = vmand (!%p332_p3), %vm616_vm8, %vm617_vm9  ;;  %v619_v46 = vld [vmem:[%s615_s12] sm:$0x7] (!%p332_p3) }
  0x10   : > { %s1223_s25 = smov (!%p402_p5, %s1034_s25), 1  ;;  %v1004_v50 = vld [vmem:[%s1208_s4] sm:$0xff] (%p622_p7)   ;;  %v1054_v51 = vmov (%p622_p7), 0.0   ;;  %v1005_v52 = vld [vmem:[%s1208_s4 + $0x8] sm:$0xff] (%p622_p7)   ;;  %vm1055_vm11 = vmmov (%p622_p7), 0   ;;  %v1006_v53 = vld [vmem:[%s1208_s4 + $0x10] sm:$0xff] (%p622_p7)  }
  0x11   : > { %s412_s8 = scalar_select %p411_p6, %s1030_s24, 1  ;;  %v538_v35 = vld [vmem:[#allocation4] sm:$0x1f] }
  0x12   : > { %s891_s9 = sshll.u32 %s1223_s25, 3  ;;  %s946_s10 = smul.u32 6, %s1223_s25  ;;  %v513_v12 = vld [vmem:[#allocation2] sm:$0x1f]  ;;  %v530_v29 = vld [vmem:[#allocation3] sm:$0x1f] }
  0x13   : > { %s1134_s13 = scalar_lea.vmem %s1204_s0, %s891_s9  ;;  %s1139_s16 = scalar_lea.vmem %s1211_s7, %s891_s9  ;;  %v1007_v54 = vld [vmem:[%s1208_s4 + $0x18] sm:$0xff] (%p622_p7)   ;;  %vm677_vm12 = vcmask (%p622_p7), 523264   ;;  %v903_v58 = vld [vmem:[%s1209_s5] ss:$0 sm:$0xff] (%p622_p7)  ;;  %vm730_vm13 = vcmask (%p622_p7), 520192  }
  0x14   : > { %s417_s17 = sadd.s32 %s946_s10, %s412_s8  ;;  %v909_v60 = vld [vmem:[%s1210_s6] ss:$0 sm:$0xff] (%p622_p7) }
  0x15   : > { %s1141_s18 = sshll.u32 %s417_s17, 2  ;;  %s1053_s17 = smov (%p622_p7), 32   ;;  %v720_v63 = vld [vmem:[%s1134_s13] sm:$0x1f] (%p622_p7) }
  0x16   : > { %s419_s21 = scalar_lea.vmem %s1205_s1, %s1141_s18  ;;  %s812_s25 = scalar_lea.vmem %s1206_s2, %s1141_s18 }
  0x17   : > { %v896_v1 = vld [vmem:[%s812_s25 + $0x8] sm:$0x7]  ;;  %v462_v3 = vld [vmem:[%s419_s21] sm:$0x7]  ;;  %s818_s10 = scalar_lea.vmem %s1207_s3, %s1141_s18 }
  0x18   : > { %v471_v2 = vsel %vm466_vm2, %v896_v1, 0  ;;  %v463_v4 = vmul.bf16 1043676725, %v462_v3  ;;  %v897_v16 = vld [vmem:[%s818_s10 + $0x10] sm:$0x7] }
  0x19   : > { %923 = vmatpush3.bf16.xpose.msra.mxu0 %v471_v2  ;;  %v555_v20 = vand.u32 %v897_v16, %v553_v19 }
  0x1a   : > { %934 = vmatprep.subr.bf16.mxu0 (%p622_p7), %v1054_v51 }
  0x1b   : > { %929 = vmatpush3.bf16.msra.mxu1 %v555_v20 }
  0x20   : > { %925 = vmatmul.mubr.msk.bf16.vlgmr.msra.gmra.mrb[0].mxu0 %vm466_vm2, %v463_v4 }
  0x21   : > { %935 = vmatpush3.bf16.msra.mxu0 (%p622_p7), %v1004_v50  ;;  %942 = vmatprep.mubr.msk.bf16.mxu0 (%p622_p7), %vm1055_vm11, %v1054_v51 }
  0x22   : > { %936 = vmatprep.subr.bf16.mxu0 (%p622_p7), %v1054_v51 }
  0x25   : > { %937 = vmatpush3.bf16.msra.mxu0 (%p622_p7), %v1005_v52 }
  0x26   : > { %938 = vmatprep.subr.bf16.mxu0 (%p622_p7), %v1054_v51 }
  0x29   : > { %939 = vmatpush3.bf16.msra.mxu0 (%p622_p7), %v1006_v53 }
  0x2a   : > { %940 = vmatprep.subr.bf16.mxu0 (%p622_p7), %v1054_v51 }
  0x2d   : > { %941 = vmatpush3.bf16.msra.mxu0 (%p622_p7), %v1007_v54 }
  0xf3   : > { %v507_v6 = vpop.f32.mrb[0].mxu0 }
  0xf4   : > { %v926_v7 = vpop.f32.mrb[1].mxu0  ;;  %v515_v8 = vsel %vm514_vm4, %v507_v6, -inf }
  0xf5   : > { %516 = vmax.xlane.f32.xlu0 %v515_v8  ;;  %v510_v9 = vpop.f32.mrb[2].mxu0 }
  0xf6   : > { %v927_v10 = vpop.f32.mrb[3].mxu0 }
 0x182   : > { %v517_v13 = vpop.xlane.xlu0 %516 }
 0x183   : > { %v518_v14 = vmax.f32 %v513_v12, %v517_v13 }
 0x185   : > { %v519_v15 = vsub.f32 %v513_v12, %v518_v14  ;;  %600 = vst.msk [vmem:[#allocation2] sm:$0x1f] %vm457_vm3, %v518_v14  ;;  %524 = vperm.xlu0 %995, %v518_v14  }
 0x187   : > { %v520_v27 = vmul.f32 1.442695, %v519_v15 }
 0x204   : > { %v525_v21 = vpop.permute.xlu0 %524 }
 0x205   : > { %v527_v22 = vsub.f32 %v507_v6, %v525_v21 }
 0x207   : > { %v528_v23 = vmul.f32 1.442695, %v527_v22 }
 0x209   : > { %997 = vpow2.f32 %v528_v23 }
 0x20a   : > { %999 = vpow2.f32 %v520_v27 }
 0x213   : > { %v998_v24 = vpop.eup %997 }
 0x214   : > { %v532_v25 = vsel %vm514_vm4, %v998_v24, 0.0  ;;  %v545_v26 = vpack.c.bf16 %v998_v24, %v998_v24  ;;  %v1000_v28 = vpop.eup %999 }
 0x215   : > { %533 = vadd.xlane.f32.xlu1 %v532_v25  ;;  %v531_v30 = vmul.f32 %v1000_v28, %v530_v29 }
 0x216   : > { %931 = vmatmul.mubr.msk.bf16.vlgmr.msra.gmra.mrb[0].mxu1 %vm546_vm7, %v545_v26 }
 0x226   : > { %541 = vperm.xlu1 %996, %v1000_v28  }
 0x2a2   : > { %v534_v31 = vpop.xlane.xlu1 %533 }
 0x2a3   : > { %v535_v32 = vadd.f32 %v534_v31, %v531_v30 }
 0x2a5   : > { %537 = vst.msk [vmem:[#allocation3] sm:$0x1f] %vm457_vm3, %v535_v32 }
 0x2a6   : > { %v542_v36 = vpop.permute.xlu1 %541 }
 0x2a7   : > { %v544_v37 = vmul.f32 %v542_v36, %v538_v35 }
 0x2ac   : > { %v605_v33 = vld [vmem:[#allocation3] sm:$0x1f] }
 0x2ad   : > { %1001 = vrcp.f32 %v605_v33 }
 0x2b7   : > { %v1002_v34 = vpop.eup %1001 }
 0x2b8   : > { %609 = vperm.xlu1 %996, %v1002_v34  }
 0x2e9   : > { %v591_v38 = vpop.f32.mrb[0].mxu1 }
 0x2ea   : > { %v597_v39 = vadd.f32 %v591_v38, %v544_v37  ;;  %v932_v40 = vpop.f32.mrb[1].mxu1 }
 0x2eb   : > { %v594_v41 = vpop.f32.mrb[2].mxu1 }
 0x2ec   : > { %599 = vst.msk [vmem:[#allocation4] sm:$0x1f] %vm460_vm0, %v597_v39  ;;  %v933_v42 = vpop.f32.mrb[3].mxu1 }
 0x2f3   : > { %v604_v43 = vld [vmem:[#allocation4] sm:$0x1f] }
 0x337   : > { %v610_v44 = vpop.permute.xlu1 %609  ;;  %626 = sbr.rel (!%p622_p7) target bundleno = 1172 (0x494), region = 60 }
 0x338   : > { %v612_v45 = vmul.f32 %v610_v44, %v604_v43 }
 0x33a   : > { %v613_v47 = vpack.c.bf16 %v612_v45, %v612_v45 }
 0x33c   : > { %v620_v48 = vsel %vm618_vm10, %v613_v47, %v619_v46 }
 0x33d   : > { %621 = vst [vmem:[%s615_s12] sm:$0x7] %v620_v48 }
 0x344   : > { %v1003_v49 = vld [vmem:[#allocation5 + $0x4] ss:$0 sps:$4 sm:$0x77]   ;;  %v627_v55 = vld [vmem:[#allocation5] sm:$0x7] }
 0x345   : > { %633 = vrot.lane.b32.xlu0 %v1003_v49, %s1053_s17 }
 0x3b7   : > { %v634_v56 = vpop.permute.xlu0 %633 }
 0x3b8   : > { %v637_v57 = vsel %vm466_vm2, %v627_v55, %v634_v56 }
 0x3b9   : > { %943 = vmatmul.mubr.msk.bf16.vlgmr.msra.gmra.mrb[0].mxu0 %vm677_vm12, %v637_v57 }
 0x48c   : > { %v714_v59 = vpop.f32.mrb[0].mxu0 }
 0x48d   : > { %v715_v61 = vadd.f32 %v903_v58, %v714_v59  ;;  %v944_v62 = vpop.f32.mrb[1].mxu0 }
 0x48e   : > { %v717_v0 = vpop.f32.mrb[2].mxu0 }
 0x48f   : > { %v728_v1 = vmul.f32 %v909_v60, %v715_v61  ;;  %v945_v2 = vpop.f32.mrb[3].mxu0 }
 0x491   : > { %v729_v3 = vadd.f32 %v728_v1, %v720_v63 }
 0x493   : > { %731 = vst.msk [vmem:[%s1139_s16] sm:$0x1f] %vm730_vm13, %v729_v3 }
 0x494 PF: > { %s17_s28 = sadd.s32 1, %s1046_s28   ;;  %s1212_s24 = smov %s1038_s26 }
 0x495   : > { %p14_p8 = scmp.ge.s32.totalorder %s17_s28, 6   ;;  %s1213_s25 = smov %s1042_s27 }
 0x496   : > { %s1214_s26 = smov %s1217_s29  ;;  %s1215_s27 = smov %s1221_s30 }
 0x497   :  { %16 = sbr.rel (!%p14_p8) target bundleno = 3 (0x3), region = 101 }

// kernel: _lambda_.12
= control target key start
LH: loop header
LB: loop body
LE: loop exit
PB: predicated region body
PF: predicated region fallthrough
CT: control target
= control target key end

     0   :  { %vm36_vm0 = vcmask 523264   ;;  %vm40_vm1 = vcmask 517120   ;;  %v557_v22 = vmov 0   ;;  %vm91_vm2 = vcmask 519168   ;;  %s722_s0 = inlined_call_operand.vmem [shape: f32[10,64], index: 0, kind: input, shape index: {}]   ;;  %s723_s3 = inlined_call_operand.vmem [shape: bf16[64,256], index: 3, kind: input, shape index: {}]   ;;  %s724_s1 = inlined_call_operand.vmem [shape: f32[1,64], index: 1, kind: input, shape index: {}]   ;;  %s725_s2 = inlined_call_operand.vmem [shape: f32[1,64], index: 2, kind: input, shape index: {}]   ;;  %s726_s5 = inlined_call_operand.vmem [shape: bf16[256,64], index: 5, kind: input, shape index: {}]   ;;  %s727_s4 = inlined_call_operand.vmem [shape: f32[1,256], index: 4, kind: input, shape index: {}]   ;;  %s728_s6 = inlined_call_operand.vmem [shape: f32[1,64], index: 6, kind: input, shape index: {}]   ;;  %s729_s7 = inlined_call_operand.vmem [shape: f32[1,64], index: 7, kind: input, shape index: {}]   ;;  %s730_s8 = inlined_call_operand.vmem [shape: f32[10,64], index: 8, kind: output, shape index: {}]  }
   0x1   :  { %v607_v0 = vld [vmem:[%s722_s0] sm:$0xff]  ;;  %v35_v1 = vld [vmem:[%s722_s0 + $0x8] sm:$0x3]  ;;  %v519_v16 = vld [vmem:[%s723_s3 + $0x14] ss:$8 sps:$4 sm:$0xff]   ;;  %200 = vmatprep.mubr.bf16.mxu0 %v557_v22  ;;  %vm93_vm3 = vcmask 516096   ;;  %v109_v58 = vlaneseq }
   0x2   :  { %v37_v2 = vsel %vm36_vm0, %v607_v0, 0.0  ;;  %v41_v3 = vsel %vm40_vm1, %v35_v1, 0.0  ;;  %v516_v14 = vld [vmem:[%s723_s3 + $0x4] ss:$8 sps:$4 sm:$0xff]   ;;  %v518_v15 = vld [vmem:[%s723_s3] ss:$8 sps:$4 sm:$0xff]  }
   0x3   :  { %38 = vadd.xlane.f32.xlu0 %v37_v2  ;;  %168 = vmatprep.subr.bf16.mxu0 %v516_v14  ;;  %v521_v17 = vld [vmem:[%s723_s3 + $0x10] ss:$8 sps:$4 sm:$0xff]   ;;  %v522_v18 = vld [vmem:[%s723_s3 + $0x24] ss:$8 sps:$4 sm:$0xff]   ;;  %v524_v19 = vld [vmem:[%s723_s3 + $0x20] ss:$8 sps:$4 sm:$0xff]  }
   0x4   :  { %169 = vmatpush1.bf16.msra.mxu0 %v518_v15  ;;  %v525_v20 = vld [vmem:[%s723_s3 + $0x34] ss:$8 sps:$4 sm:$0xff]   ;;  %v527_v21 = vld [vmem:[%s723_s3 + $0x30] ss:$8 sps:$4 sm:$0xff]   ;;  %v458_v30 = vld [vmem:[%s724_s1] ss:$0 sm:$0xff] }
   0x5   :  { %170 = vmatprep.subr.bf16.mxu0 %v519_v16  ;;  %v459_v32 = vld [vmem:[%s725_s2] ss:$0 sm:$0xff]  ;;  %v531_v44 = vld [vmem:[%s726_s5 + $0x48] sm:$0xff]   ;;  %v533_v46 = vld [vmem:[%s726_s5 + $0x50] sm:$0xff]   ;;  %v110_v59 = vshrl.u32 %v109_v58, 7 }
   0x6   :  { %v529_v42 = vld [vmem:[%s726_s5 + $0x40] sm:$0xff]   ;;  %v532_v45 = vld [vmem:[%s726_s5 + $0x8] sm:$0xff]   ;;  %v534_v47 = vld [vmem:[%s726_s5 + $0x10] sm:$0xff]  }
   0x7   :  { %42 = vadd.xlane.f32.xlu0 %v41_v3  ;;  %v530_v43 = vld [vmem:[%s726_s5] sm:$0xff]   ;;  %492 = vmatprep.subr.bf16.mxu1 %v529_v42  ;;  %v535_v48 = vld [vmem:[%s726_s5 + $0x58] sm:$0xff]   ;;  %v539_v52 = vld [vmem:[%s726_s5 + $0x68] sm:$0xff]   ;;  %v111_v60 = vsub.s32 0, %v110_v59  ;;  %v115_v62 = vsub.s32 1, %v110_v59 }
   0x8   :  { %171 = vmatpush1.bf16.msra.mxu0 %v521_v17  ;;  %493 = vmatpush3.bf16.msra.mxu1 %v530_v43  ;;  %v536_v49 = vld [vmem:[%s726_s5 + $0x18] sm:$0xff]   ;;  %v537_v50 = vld [vmem:[%s726_s5 + $0x60] sm:$0xff]   ;;  %v540_v53 = vld [vmem:[%s726_s5 + $0x28] sm:$0xff]  }
   0x9   :  { %172 = vmatprep.subr.bf16.mxu0 %v522_v18  ;;  %494 = vmatprep.subr.bf16.mxu1 %v531_v44  ;;  %v538_v51 = vld [vmem:[%s726_s5 + $0x20] sm:$0xff]   ;;  %v541_v54 = vld [vmem:[%s726_s5 + $0x70] sm:$0xff]   ;;  %v543_v56 = vld [vmem:[%s726_s5 + $0x78] sm:$0xff]  }
   0xa   :  { %v542_v55 = vld [vmem:[%s726_s5 + $0x30] sm:$0xff]   ;;  %v544_v57 = vld [vmem:[%s726_s5 + $0x38] sm:$0xff]   ;;  %v107_v61 = vld [vmem:[%s727_s4] sm:$0x3] }
   0xb   :  { %v112_v63 = vrot.slane %v107_v61, %v111_v60  ;;  %v488_v59 = vld [vmem:[%s728_s6] ss:$0 sm:$0xff] }
   0xc   :  { %173 = vmatpush1.bf16.msra.mxu0 %v524_v19  ;;  %495 = vmatpush3.bf16.msra.mxu1 %v532_v45 }
   0xd   :  { %174 = vmatprep.subr.bf16.mxu0 %v525_v20  ;;  %496 = vmatprep.subr.bf16.mxu1 %v533_v46 }
  0x10   :  { %175 = vmatpush1.bf16.msra.mxu0 %v527_v21  ;;  %497 = vmatpush3.bf16.msra.mxu1 %v534_v47 }
  0x11   :  { %498 = vmatprep.subr.bf16.mxu1 %v535_v48  ;;  %v558_v48 = vmov 0.0  }
  0x12   :  { %95 = vst.msk [vmem:[#allocation2] sm:$0xff] %vm36_vm0, %v558_v48 }
  0x13   :  { %96 = vst.msk [vmem:[#allocation2 + $0x8] sm:$0x3] %vm40_vm1, %v558_v48 }
  0x14   :  { %499 = vmatpush3.bf16.msra.mxu1 %v536_v49 }
  0x15   :  { %500 = vmatprep.subr.bf16.mxu1 %v537_v50 }
  0x18   :  { %501 = vmatpush3.bf16.msra.mxu1 %v538_v51 }
  0x19   :  { %502 = vmatprep.subr.bf16.mxu1 %v539_v52  ;;  %v247_v50 = vld [vmem:[#allocation2] sm:$0xff] }
  0x1c   :  { %503 = vmatpush3.bf16.msra.mxu1 %v540_v53 }
  0x1d   :  { %504 = vmatprep.subr.bf16.mxu1 %v541_v54  ;;  %v248_v54 = vld [vmem:[#allocation2 + $0x8] sm:$0x3] }
  0x20   :  { %505 = vmatpush3.bf16.msra.mxu1 %v542_v55 }
  0x21   :  { %506 = vmatprep.subr.bf16.mxu1 %v543_v56 }
  0x24   :  { %507 = vmatpush3.bf16.msra.mxu1 %v544_v57 }
  0x90   :  { %v39_v4 = vpop.xlane.xlu0 %38 }
  0x91   :  { %v45_v5 = vmul.f32 0.015625, %v39_v4 }
  0x93   :  { %v47_v6 = vsub.f32 %v607_v0, %v45_v5 }
  0x94   :  { %v43_v7 = vpop.xlane.xlu0 %42 }
  0x95   :  { %v46_v8 = vmul.f32 0.015625, %v43_v7  ;;  %v49_v9 = vmul.f32 %v47_v6, %v47_v6 }
  0x97   :  { %v48_v10 = vsub.f32 %v35_v1, %v46_v8  ;;  %v51_v11 = vsel %vm36_vm0, %v49_v9, 0.0  ;;  %v116_v1 = vrot.slane %v107_v61, %v115_v62  ;;  %v489_v61 = vld [vmem:[%s729_s7] ss:$0 sm:$0xff] }
  0x98   :  { %52 = vadd.xlane.f32.xlu1 %v51_v11 }
  0x99   :  { %v50_v12 = vmul.f32 %v48_v10, %v48_v10 }
  0x9b   :  { %v54_v13 = vsel %vm40_vm1, %v50_v12, 0.0 }
  0x9c   :  { %55 = vadd.xlane.f32.xlu1 %v54_v13 }
 0x125   :  { %v53_v23 = vpop.xlane.xlu1 %52 }
 0x126   :  { %v57_v24 = vmul.f32 0.015625, %v53_v23 }
 0x128   :  { %v59_v25 = vadd.f32 1e-06, %v57_v24 }
 0x129   :  { %v56_v26 = vpop.xlane.xlu1 %55 }
 0x12a   :  { %545 = vrsqrt.f32 %v59_v25  ;;  %v58_v27 = vmul.f32 0.015625, %v56_v26 }
 0x12c   :  { %v60_v28 = vadd.f32 1e-06, %v58_v27 }
 0x12e   :  { %547 = vrsqrt.f32 %v60_v28 }
 0x134   :  { %v546_v29 = vpop.eup %545 }
 0x135   :  { %v63_v31 = vmul.f32 %v546_v29, %v47_v6 }
 0x137   :  { %v72_v33 = vmul.f32 %v458_v30, %v63_v31 }
 0x138   :  { %v548_v34 = vpop.eup %547 }
 0x139   :  { %v81_v35 = vadd.f32 %v459_v32, %v72_v33  ;;  %v64_v36 = vmul.f32 %v548_v34, %v48_v10 }
 0x13b   :  { %v490_v37 = vpack.c.bf16 %v81_v35, %v81_v35  ;;  %v73_v38 = vmul.f32 %v458_v30, %v64_v36 }
 0x13d   :  { %92 = vst.msk [vmem:[#allocation3] sm:$0xf] %vm91_vm2, %v490_v37  ;;  %v82_v39 = vadd.f32 %v459_v32, %v73_v38 }
 0x13f   :  { %v491_v40 = vpack.c.bf16 %v82_v39, %v82_v39 }
 0x141   :  { %94 = vst.msk [vmem:[#allocation3 + $0x4] sm:$0x1] %vm93_vm3, %v491_v40 }
 0x148   :  { %v528_v41 = vld [vmem:[#allocation3] sm:$0x1f]  }
 0x149   :  { %471 = vmatmul.mubr.msk.bf16.vlgmr.msra.gmra.mrb[0].mxu0 %vm36_vm0, %v528_v41 }
 0x21c   :  { %v202_v2 = vpop.f32.mrb[0].mxu0 }
 0x21d   :  { %v203_v3 = vadd.f32 %v202_v2, %v112_v63  ;;  %v204_v4 = vpop.f32.mrb[1].mxu0 }
 0x21e   :  { %v205_v5 = vadd.f32 %v204_v4, %v116_v1  ;;  %v206_v6 = vpop.f32.mrb[2].mxu0 }
 0x21f   :  { %v211_v7 = vmul.f32 %v203_v3, %v203_v3  ;;  %v207_v8 = vadd.f32 %v206_v6, %v112_v63  ;;  %v208_v9 = vpop.f32.mrb[3].mxu0 }
 0x220   :  { %v212_v10 = vmul.f32 %v205_v5, %v205_v5  ;;  %v209_v11 = vadd.f32 %v208_v9, %v116_v1 }
 0x221   :  { %v215_v12 = vmul.f32 %v211_v7, %v203_v3  ;;  %v213_v13 = vmul.f32 %v207_v8, %v207_v8 }
 0x222   :  { %v216_v14 = vmul.f32 %v212_v10, %v205_v5  ;;  %v214_v15 = vmul.f32 %v209_v11, %v209_v11 }
 0x223   :  { %v219_v16 = vmul.f32 0.044715, %v215_v12  ;;  %v217_v17 = vmul.f32 %v213_v13, %v207_v8 }
 0x224   :  { %v220_v18 = vmul.f32 0.044715, %v216_v14  ;;  %v218_v19 = vmul.f32 %v214_v15, %v209_v11 }
 0x225   :  { %v223_v20 = vadd.f32 %v219_v16, %v203_v3  ;;  %v221_v21 = vmul.f32 0.044715, %v217_v17 }
 0x226   :  { %v222_v22 = vmul.f32 0.044715, %v218_v19  ;;  %v224_v23 = vadd.f32 %v220_v18, %v205_v5 }
 0x227   :  { %v227_v24 = vmul.f32 0.7978846, %v223_v20  ;;  %v225_v25 = vadd.f32 %v221_v21, %v207_v8 }
 0x228   :  { %v226_v26 = vadd.f32 %v222_v22, %v209_v11  ;;  %v228_v27 = vmul.f32 0.7978846, %v224_v23 }
 0x229   :  { %549 = vtanh.f32 %v227_v24  ;;  %v229_v28 = vmul.f32 0.7978846, %v225_v25 }
 0x22a   :  { %v230_v29 = vmul.f32 0.7978846, %v226_v26  ;;  %551 = vtanh.f32 %v228_v27 }
 0x22b   :  { %553 = vtanh.f32 %v229_v28 }
 0x22c   :  { %555 = vtanh.f32 %v230_v29 }
 0x233   :  { %v550_v30 = vpop.eup %549 }
 0x234   :  { %v552_v31 = vpop.eup %551  ;;  %v235_v32 = vadd.f32 1.0, %v550_v30 }
 0x235   :  { %v554_v33 = vpop.eup %553  ;;  %v236_v34 = vadd.f32 1.0, %v552_v31 }
 0x236   :  { %v556_v35 = vpop.eup %555  ;;  %v237_v36 = vadd.f32 1.0, %v554_v33  ;;  %v239_v37 = vmul.f32 0.5, %v235_v32 }
 0x237   :  { %v238_v38 = vadd.f32 1.0, %v556_v35  ;;  %v240_v39 = vmul.f32 0.5, %v236_v34 }
 0x238   :  { %v241_v40 = vmul.f32 0.5, %v237_v36  ;;  %v243_v42 = vmul.f32 %v239_v37, %v203_v3  ;;  %v440_v3 = vld [vmem:[%s722_s0 + $0x8] sm:$0x3] }
 0x239   :  { %v242_v41 = vmul.f32 0.5, %v238_v38  ;;  %v244_v44 = vmul.f32 %v240_v39, %v205_v5 }
 0x23a   :  { %v245_v43 = vmul.f32 %v241_v40, %v207_v8 }
 0x23b   :  { %v246_v45 = vmul.f32 %v242_v41, %v209_v11 }
 0x23c   :  { %v249_v46 = vpack.c.bf16 %v245_v43, %v243_v42 }
 0x23d   :  { %v250_v47 = vpack.c.bf16 %v246_v45, %v244_v44 }
 0x23f   :  { %411 = vmatprep.mubr.bf16.mxu1 %v250_v47 }
 0x240   :  { %412 = vmatmul.mubr.bf16.vlgmr.msra.gmra.mrb[0].mxu1 %v249_v46 }
 0x313   :  { %v508_v49 = vpop.f32.mrb[0].mxu1 }
 0x314   :  { %v509_v51 = vpop.f32.mrb[1].mxu1 }
 0x315   :  { %v510_v52 = vadd.f32 %v509_v51, %v508_v49  ;;  %v511_v53 = vpop.f32.mrb[2].mxu1 }
 0x316   :  { %v512_v55 = vpop.f32.mrb[3].mxu1 }
 0x317   :  { %v420_v56 = vadd.f32 %v510_v52, %v247_v50  ;;  %v513_v57 = vadd.f32 %v512_v55, %v511_v53 }
 0x319   :  { %422 = vst.msk [vmem:[#allocation2] sm:$0xff] %vm36_vm0, %v420_v56  ;;  %v421_v58 = vadd.f32 %v513_v57, %v248_v54 }
 0x31b   :  { %424 = vst.msk [vmem:[#allocation2 + $0x8] sm:$0x3] %vm40_vm1, %v421_v58 }
 0x320   :  { %v428_v60 = vld [vmem:[#allocation2] sm:$0xff] }
 0x321   :  { %v437_v62 = vadd.f32 %v488_v59, %v428_v60 }
 0x322   :  { %v429_v63 = vld [vmem:[#allocation2 + $0x8] sm:$0x3] }
 0x323   :  { %v448_v1 = vmul.f32 %v489_v61, %v437_v62  ;;  %v438_v2 = vadd.f32 %v488_v59, %v429_v63 }
 0x325   :  { %v450_v4 = vadd.f32 %v448_v1, %v607_v0  ;;  %v449_v5 = vmul.f32 %v489_v61, %v438_v2 }
 0x327   :  { %452 = vst.msk [vmem:[%s730_s8] sm:$0xff] %vm36_vm0, %v450_v4  ;;  %v451_v6 = vadd.f32 %v449_v5, %v440_v3 }
 0x329   :  { %453 = vst.msk [vmem:[%s730_s8 + $0x8] sm:$0x3] %vm40_vm1, %v451_v6 }

// kernel: _lambda_.17
= control target key start
LH: loop header
LB: loop body
LE: loop exit
PB: predicated region body
PF: predicated region fallthrough
CT: control target
= control target key end

     0   :  { %v137_v0 = vmov 0.0   ;;  %vm138_vm0 = vmmov 0   ;;  %vm58_vm1 = vcmask 523264   ;;  %vm102_vm2 = vcmask 1024   ;;  %s180_s1 = inlined_call_operand.vmem [shape: bf16[64,1], index: 1, kind: input, shape index: {}]   ;;  %s181_s2 = inlined_call_operand.<no memory space> [shape: f32[1,1], index: 2, kind: input, shape index: {}]   ;;  %s182_s0 = inlined_call_operand.vmem [shape: f32[2,64], index: 0, kind: input, shape index: {}]   ;;  %s183_s3 = inlined_call_operand.vmem [shape: f32[2,1], index: 3, kind: output, shape index: {}]  }
   0x1   :  { %119 = vmatprep.subr.bf16.mxu0 %v137_v0  ;;  %v133_v1 = vld [vmem:[%s180_s1] sm:$0xff]   ;;  %127 = vmatprep.mubr.msk.bf16.mxu0 %vm138_vm0, %v137_v0  ;;  %v8_v2 = vstv %s181_s2  ;;  %v134_v3 = vld [vmem:[%s180_s1 + $0x8] sm:$0xff]   ;;  %v135_v4 = vld [vmem:[%s180_s1 + $0x10] sm:$0xff]  }
   0x2   :  { %9 = vst [vmem:[#allocation2] sm:$0x1] %v8_v2  ;;  %120 = vmatpush3.bf16.msra.mxu0 %v133_v1  ;;  %v136_v5 = vld [vmem:[%s180_s1 + $0x18] sm:$0xff]   ;;  %v17_v6 = vld [vmem:[%s182_s0] sm:$0x3] }
   0x3   :  { %121 = vmatprep.subr.bf16.mxu0 %v137_v0  ;;  %v18_v7 = vpack.c.bf16 %v17_v6, %v17_v6 }
   0x6   :  { %122 = vmatpush3.bf16.msra.mxu0 %v134_v3 }
   0x7   :  { %123 = vmatprep.subr.bf16.mxu0 %v137_v0 }
   0x9   :  { %v108_v8 = vld [vmem:[#allocation2] ss:$0 sm:$0xff] }
   0xa   :  { %124 = vmatpush3.bf16.msra.mxu0 %v135_v4 }
   0xb   :  { %125 = vmatprep.subr.bf16.mxu0 %v137_v0 }
   0xe   :  { %126 = vmatpush3.bf16.msra.mxu0 %v136_v5 }
  0x11   :  { %128 = vmatmul.mubr.msk.bf16.vlgmr.msra.gmra.mrb[0].mxu0 %vm58_vm1, %v18_v7 }
  0xe4   :  { %v96_v9 = vpop.f32.mrb[0].mxu0 }
  0xe5   :  { %v97_v10 = vadd.f32 %v108_v8, %v96_v9  ;;  %v129_v11 = vpop.f32.mrb[1].mxu0 }
  0xe6   :  { %v99_v12 = vpop.f32.mrb[2].mxu0 }
  0xe7   :  { %103 = vst.msk [vmem:[%s183_s3] sm:$0x3] %vm102_vm2, %v97_v10  ;;  %v130_v13 = vpop.f32.mrb[3].mxu0 }

// kernel: _lambda_.16
= control target key start
LH: loop header
LB: loop body
LE: loop exit
PB: predicated region body
PF: predicated region fallthrough
CT: control target
= control target key end

     0   :  { %vm16_vm0 = vcmask 523264   ;;  %vm20_vm1 = vcmask 517120   ;;  %s119_s0 = inlined_call_operand.vmem [shape: f32[10,64], index: 0, kind: input, shape index: {}]   ;;  %s120_s1 = inlined_call_operand.vmem [shape: f32[1,64], index: 1, kind: input, shape index: {}]   ;;  %s121_s2 = inlined_call_operand.vmem [shape: f32[1,64], index: 2, kind: input, shape index: {}]   ;;  %s122_s3 = inlined_call_operand.vmem [shape: f32[10,64], index: 3, kind: output, shape index: {}]  }
   0x1   :  { %v14_v0 = vld [vmem:[%s119_s0] sm:$0xff]  ;;  %v15_v1 = vld [vmem:[%s119_s0 + $0x8] sm:$0x3] }
   0x2   :  { %v17_v2 = vsel %vm16_vm0, %v14_v0, 0.0  ;;  %v21_v3 = vsel %vm20_vm1, %v15_v1, 0.0  ;;  %v69_v21 = vld [vmem:[%s120_s1] ss:$0 sm:$0xff] }
   0x3   :  { %18 = vadd.xlane.f32.xlu0 %v17_v2  ;;  %v70_v23 = vld [vmem:[%s121_s2] ss:$0 sm:$0xff] }
   0x7   :  { %22 = vadd.xlane.f32.xlu0 %v21_v3 }
  0x90   :  { %v19_v4 = vpop.xlane.xlu0 %18 }
  0x91   :  { %v25_v5 = vmul.f32 0.015625, %v19_v4 }
  0x93   :  { %v27_v6 = vsub.f32 %v14_v0, %v25_v5 }
  0x94   :  { %v23_v7 = vpop.xlane.xlu0 %22 }
  0x95   :  { %v26_v8 = vmul.f32 0.015625, %v23_v7  ;;  %v29_v9 = vmul.f32 %v27_v6, %v27_v6 }
  0x97   :  { %v28_v10 = vsub.f32 %v15_v1, %v26_v8  ;;  %v31_v11 = vsel %vm16_vm0, %v29_v9, 0.0 }
  0x98   :  { %32 = vadd.xlane.f32.xlu1 %v31_v11 }
  0x99   :  { %v30_v12 = vmul.f32 %v28_v10, %v28_v10 }
  0x9b   :  { %v34_v13 = vsel %vm20_vm1, %v30_v12, 0.0 }
  0x9c   :  { %35 = vadd.xlane.f32.xlu1 %v34_v13 }
 0x125   :  { %v33_v14 = vpop.xlane.xlu1 %32 }
 0x126   :  { %v37_v15 = vmul.f32 0.015625, %v33_v14 }
 0x128   :  { %v39_v16 = vadd.f32 1e-06, %v37_v15 }
 0x129   :  { %v36_v17 = vpop.xlane.xlu1 %35 }
 0x12a   :  { %71 = vrsqrt.f32 %v39_v16  ;;  %v38_v18 = vmul.f32 0.015625, %v36_v17 }
 0x12c   :  { %v40_v19 = vadd.f32 1e-06, %v38_v18 }
 0x12e   :  { %73 = vrsqrt.f32 %v40_v19 }
 0x134   :  { %v72_v20 = vpop.eup %71 }
 0x135   :  { %v43_v22 = vmul.f32 %v72_v20, %v27_v6 }
 0x137   :  { %v52_v24 = vmul.f32 %v69_v21, %v43_v22 }
 0x138   :  { %v74_v25 = vpop.eup %73 }
 0x139   :  { %v61_v26 = vadd.f32 %v70_v23, %v52_v24  ;;  %v44_v27 = vmul.f32 %v74_v25, %v28_v10 }
 0x13b   :  { %63 = vst.msk [vmem:[%s122_s3] sm:$0xff] %vm16_vm0, %v61_v26  ;;  %v53_v28 = vmul.f32 %v69_v21, %v44_v27 }
 0x13d   :  { %v62_v29 = vadd.f32 %v70_v23, %v53_v28 }
 0x13f   :  { %64 = vst.msk [vmem:[%s122_s3 + $0x8] sm:$0x3] %vm20_vm1, %v62_v29 }

</bundles_post_ra>
